<compile_context>
chip_gen: v6e
topology: v6e:2x2x1
jax: 0.10.0
libtpu: 0.0.40
codegen_flags: <defaults>
</compile_context>

<pallas_src>
import math
from functools import partial

import jax
import jax.numpy as jnp
from jax import lax
from jax.experimental import pallas as pl
from jax.experimental.pallas import tpu as pltpu


_VMEM_LIMIT_BYTES = 48 * 1024 * 1024  # > v5e 16MiB default, < v7x 64MiB physical


# ----------------------------------------------------------------------------
# Kernels: fused conv (3x3/s2 expressed as 2x2/s1 on the flattened phase-split
# input) + folded BatchNorm + ReLU [+ final 1x1 projection with bias].
# One grid step = one batch image.
# ----------------------------------------------------------------------------
def _stem_act(pf_ref, w_ref, scale_ref, shift_ref, *, wo, mo):
    """Conv(3x3,s2,p1) + folded BN + ReLU on the flattened phase-split input.

    pf_ref:    (Mp+1, 4*Cin) bf16, Mp = (Ho+1)*(Wo+1), flattened phase image
               padded with one guard row.
    w_ref:     (4, 4*Cin, Cout) bf16 combined 2x2 tap weights.
    scale_ref: (1, Cout) f32 folded BN scale.   shift_ref: (1, Cout) f32.
    Returns the activated (mo, Cout) f32 block where row i corresponds to
    output pixel (i // (wo+1), i % (wo+1)); columns x == wo are junk and are
    dropped by the wrapper.
    """
    w00 = w_ref[0]
    w01 = w_ref[1]
    w10 = w_ref[2]
    w11 = w_ref[3]
    # Four statically shifted row-windows of the flat phase image == the nine
    # 3x3 taps.  Each tap is a single large matmul (M = mo).
    acc = jnp.dot(pf_ref[pl.ds(0, mo), :], w00, preferred_element_type=jnp.float32)
    acc = acc + jnp.dot(pf_ref[pl.ds(1, mo), :], w01,
                        preferred_element_type=jnp.float32)
    acc = acc + jnp.dot(pf_ref[pl.ds(wo + 1, mo), :], w10,
                        preferred_element_type=jnp.float32)
    acc = acc + jnp.dot(pf_ref[pl.ds(wo + 2, mo), :], w11,
                        preferred_element_type=jnp.float32)
    out = acc * scale_ref[...] + shift_ref[...]
    return jnp.maximum(out, 0.0)


def _conv_bn_relu_kernel(pf_ref, w_ref, scale_ref, shift_ref, o_ref, *, wo, mo):
    act = _stem_act(pf_ref, w_ref, scale_ref, shift_ref, wo=wo, mo=mo)
    o_ref[...] = act.astype(o_ref.dtype)


def _conv_bn_relu_proj_kernel(pf_ref, w_ref, scale_ref, shift_ref,
                              w1_ref, b1_ref, o_ref, *, wo, mo):
    act = _stem_act(pf_ref, w_ref, scale_ref, shift_ref, wo=wo, mo=mo)
    y = jnp.dot(act.astype(w1_ref.dtype), w1_ref[...],
                preferred_element_type=jnp.float32)
    o_ref[...] = (y + b1_ref[...]).astype(o_ref.dtype)


def conv_block(x_nhwc, wc, scale, shift, *, proj=None, out_dtype=jnp.bfloat16):
    """One stem stage: Conv2d(3x3, s2, p1, no bias) + folded BN + ReLU,
    optionally fused with the final 1x1 conv (+bias).

    x_nhwc: (B, H, W, Cin), H, W even.  wc: (4, 4*Cin, Cout).
    Returns (B, H//2, W//2, Cout[_proj]) in `out_dtype`.
    """
    B, H, W, C = x_nhwc.shape
    assert H % 2 == 0 and W % 2 == 0
    Ho, Wo = H // 2, W // 2
    K = 4 * C
    Mp = (Ho + 1) * (Wo + 1)       # rows of the flat phase image
    Mo = Ho * (Wo + 1)             # rows the kernel computes (incl. junk col)
    cout = wc.shape[-1]

    # XLA-side glue (one fused layout pass): pad + space-to-depth + flatten
    # + one guard row so all four tap windows stay in bounds.
    xp = jnp.pad(x_nhwc, ((0, 0), (1, 1), (1, 1), (0, 0)))
    p = xp.reshape(B, Ho + 1, 2, Wo + 1, 2, C)
    p = jnp.transpose(p, (0, 1, 3, 2, 4, 5)).reshape(B, Mp, K)
    pf = jnp.pad(p, ((0, 0), (0, 1), (0, 0)))            # (B, Mp+1, K)

    in_specs = [
        pl.BlockSpec((None, Mp + 1, K), lambda b: (b, 0, 0)),
        pl.BlockSpec((4, K, cout), lambda b: (0, 0, 0)),   # resident weights
        pl.BlockSpec((1, cout), lambda b: (0, 0)),         # resident BN scale
        pl.BlockSpec((1, cout), lambda b: (0, 0)),         # resident BN shift
    ]
    args = [pf, wc, scale, shift]

    if proj is None:
        kernel = partial(_conv_bn_relu_kernel, wo=Wo, mo=Mo)
        n_out = cout
    else:
        w1, b1 = proj
        assert w1.shape[0] == cout
        n_out = w1.shape[-1]
        in_specs += [
            pl.BlockSpec((cout, n_out), lambda b: (0, 0)),  # resident proj W
            pl.BlockSpec((1, n_out), lambda b: (0, 0)),     # resident proj b
        ]
        args += [w1, b1]
        kernel = partial(_conv_bn_relu_proj_kernel, wo=Wo, mo=Mo)

    out = pl.pallas_call(
        kernel,
        out_shape=jax.ShapeDtypeStruct((B, Mo, n_out), out_dtype),
        grid=(B,),
        in_specs=in_specs,
        out_specs=pl.BlockSpec((None, Mo, n_out), lambda b: (b, 0, 0)),
        compiler_params=pltpu.CompilerParams(
            dimension_semantics=("parallel",),
            vmem_limit_bytes=_VMEM_LIMIT_BYTES,
        ),
    )(*args)

    # Drop the junk column x == Wo (cheap XLA slice; fuses with the next
    # layer's pad/space-to-depth layout pass).
    return out.reshape(B, Ho, Wo + 1, n_out)[:, :, :Wo, :]


# ----------------------------------------------------------------------------
# Parameters: raw (for the reference) and prepared-once (for the kernels).
# ----------------------------------------------------------------------------
def init_conv_stem_params(key, embed_dim=32):
    assert embed_dim % 8 == 0, "Embed dimension must be divisible by 8"
    dims = [3, embed_dim // 8, embed_dim // 4, embed_dim // 2, embed_dim]
    keys = jax.random.split(key, 3 * 4 + 2)
    convs, ki = [], 0
    for l in range(4):
        cin, cout = dims[l], dims[l + 1]
        # conv weight stored HWIO (kh, kw, cin, cout)
        w = jax.random.normal(keys[ki], (3, 3, cin, cout), jnp.float32) / math.sqrt(9 * cin)
        ki += 1
        gamma = 1.0 + 0.1 * jax.random.normal(keys[ki], (cout,), jnp.float32); ki += 1
        beta = 0.1 * jax.random.normal(keys[ki], (cout,), jnp.float32); ki += 1
        convs.append(dict(w=w, gamma=gamma, beta=beta,
                          mean=0.05 * jnp.arange(cout, dtype=jnp.float32),
                          var=jnp.ones((cout,), jnp.float32), eps=1e-5))
    w1 = jax.random.normal(keys[ki], (embed_dim, embed_dim), jnp.float32) / math.sqrt(embed_dim)
    ki += 1
    b1 = 0.01 * jax.random.normal(keys[ki], (embed_dim,), jnp.float32)
    return {"convs": convs, "final": (w1, b1)}


def _space_to_depth_weights(w_hwio):
    """(3,3,Cin,Cout) HWIO conv weight -> (4, 4*Cin, Cout) combined weights of
    the equivalent 2x2/stride-1 conv on the phase-split (space-to-depth) input."""
    _, _, cin, cout = w_hwio.shape
    wc = jnp.zeros((2, 2, 4 * cin, cout), w_hwio.dtype)
    for dy in range(2):
        for dx in range(2):
            for py in range(2):
                for px in range(2):
                    ky, kx = 2 * dy + py, 2 * dx + px
                    if ky < 3 and kx < 3:
                        off = (2 * py + px) * cin
                        wc = wc.at[dy, dx, off:off + cin, :].set(w_hwio[ky, kx])
    return wc.reshape(4, 4 * cin, cout)


def prepare_stem_params(raw, compute_dtype=jnp.bfloat16):
    """Done ONCE: fold BN (eval mode), build combined 2x2 weights, cast to bf16."""
    convs = []
    for layer in raw["convs"]:
        scale = layer["gamma"] / jnp.sqrt(layer["var"] + layer["eps"])
        shift = layer["beta"] - layer["mean"] * scale
        convs.append((
            _space_to_depth_weights(layer["w"]).astype(compute_dtype),
            scale.reshape(1, -1).astype(jnp.float32),
            shift.reshape(1, -1).astype(jnp.float32),
        ))
    w1, b1 = raw["final"]
    return {"convs": convs,
            "final": (w1.astype(compute_dtype),
                      b1.reshape(1, -1).astype(jnp.float32))}


# ----------------------------------------------------------------------------
# Forward pass (Pallas) and pure-JAX reference.
# ----------------------------------------------------------------------------
def conv_stem_forward(x_nchw, prep, img_size=32, patch_size=16, flatten=True):
    assert patch_size == 16, "ConvStem only supports patch size of 16"
    B, C, H, W = x_nchw.shape
    assert H == img_size and W == img_size, \
        f"Input image size ({H}*{W}) doesn't match model ({img_size}*{img_size})."
    # NCHW -> NHWC (channels -> TPU lane axis); bf16 activations through the stem.
    x = jnp.transpose(x_nchw, (0, 2, 3, 1)).astype(jnp.bfloat16)

    convs = prep["convs"]
    for wc, scale, shift in convs[:-1]:
        x = conv_block(x, wc, scale, shift, out_dtype=jnp.bfloat16)

    # Last conv layer fused with the final 1x1 conv + bias.
    wc, scale, shift = convs[-1]
    y = conv_block(x, wc, scale, shift, proj=prep["final"], out_dtype=jnp.float32)

    Bc, Hg, Wg, E = y.shape
    if flatten:
        # NHWC (B, H*W, E) == NCHW flatten(2).transpose(1, 2)
        y = y.reshape(Bc, Hg * Wg, E)
    else:
        y = jnp.transpose(y, (0, 3, 1, 2))  # NCHW, like the PyTorch module
    return y  # norm = Identity


def conv_stem_reference(x_nchw, raw, flatten=True):
    x = jnp.transpose(x_nchw, (0, 2, 3, 1)).astype(jnp.float32)
    for layer in raw["convs"]:
        y = lax.conv_general_dilated(
            x, layer["w"], window_strides=(2, 2), padding=((1, 1), (1, 1)),
            dimension_numbers=("NHWC", "HWIO", "NHWC"))
        scale = layer["gamma"] / jnp.sqrt(layer["var"] + layer["eps"])
        shift = layer["beta"] - layer["mean"] * scale
        x = jnp.maximum(y * scale + shift, 0.0)
    w1, b1 = raw["final"]
    y = jnp.einsum("bhwc,cd->bhwd", x, w1) + b1
    if flatten:
        B, Ho, Wo, E = y.shape
        y = y.reshape(B, Ho * Wo, E)
    return y


if __name__ == "__main__":
    key = jax.random.PRNGKey(0)
    k_params, k_x = jax.random.split(key)

    embed_dim = 32     # channels: 3 -> 4 -> 8 -> 16 -> 32 -> 32
    img = 32           # patch_size 16 => four stride-2 halvings => 2x2 grid
    batch = 2

    raw = init_conv_stem_params(k_params, embed_dim=embed_dim)
    prep = prepare_stem_params(raw)
    x = jax.random.normal(k_x, (batch, 3, img, img), jnp.float32)  # NCHW like PyTorch

    fwd = jax.jit(partial(conv_stem_forward, img_size=img, patch_size=16, flatten=True))
    out = jax.block_until_ready(fwd(x, prep))

    expected = (batch, (img // 16) ** 2, embed_dim)
    assert out.shape == expected, (out.shape, expected)
    assert bool(jnp.isfinite(out).all())

    ref = conv_stem_reference(x, raw)
    max_err = float(jnp.max(jnp.abs(out - ref)))
    assert bool(jnp.allclose(out, ref, rtol=0.1, atol=0.1)), f"max abs err {max_err}"

    print("KERNEL_OK")
</pallas_src>

<mosaic_0001>
module attributes {stable_mosaic.version = 11 : i64} {
  func.func @_conv_bn_relu_kernel(%arg0: i32, %arg1: memref<1x290x12xbf16, #tpu.memory_space<vmem>>, %arg2: memref<4x12x4xbf16, #tpu.memory_space<vmem>>, %arg3: memref<1x4xf32, #tpu.memory_space<vmem>>, %arg4: memref<1x4xf32, #tpu.memory_space<vmem>>, %arg5: memref<1x272x4xbf16, #tpu.memory_space<vmem>>) attributes {dimension_semantics = [#tpu.dimension_semantics<parallel>], iteration_bounds = array<i64: 2>, scalar_prefetch = 0 : i64, scratch_operands = 0 : i64, tpu.core_type = #tpu.core_type<tc>, window_params = [{transform_indices = @transform_0, window_bounds = array<i64: 1, 290, 12>}, {pipeline_mode = #tpu.pipeline_mode<synchronous>, transform_indices = @transform_1, window_bounds = array<i64: 4, 12, 4>}, {pipeline_mode = #tpu.pipeline_mode<synchronous>, transform_indices = @transform_2, window_bounds = array<i64: 1, 4>}, {pipeline_mode = #tpu.pipeline_mode<synchronous>, transform_indices = @transform_3, window_bounds = array<i64: 1, 4>}, {transform_indices = @transform_4, window_bounds = array<i64: 1, 272, 4>}]} {
    %c0 = arith.constant 0 : index
    %c0_0 = arith.constant 0 : index
    %c0_1 = arith.constant 0 : index
    %0 = vector.load %arg2[%c0, %c0_0, %c0_1] : memref<4x12x4xbf16, #tpu.memory_space<vmem>>, vector<1x12x4xbf16>
    %1 = vector.shape_cast %0 : vector<1x12x4xbf16> to vector<12x4xbf16>
    %c1 = arith.constant 1 : index
    %c0_2 = arith.constant 0 : index
    %c0_3 = arith.constant 0 : index
    %2 = vector.load %arg2[%c1, %c0_2, %c0_3] : memref<4x12x4xbf16, #tpu.memory_space<vmem>>, vector<1x12x4xbf16>
    %3 = vector.shape_cast %2 : vector<1x12x4xbf16> to vector<12x4xbf16>
    %c2 = arith.constant 2 : index
    %c0_4 = arith.constant 0 : index
    %c0_5 = arith.constant 0 : index
    %4 = vector.load %arg2[%c2, %c0_4, %c0_5] : memref<4x12x4xbf16, #tpu.memory_space<vmem>>, vector<1x12x4xbf16>
    %5 = vector.shape_cast %4 : vector<1x12x4xbf16> to vector<12x4xbf16>
    %c3 = arith.constant 3 : index
    %c0_6 = arith.constant 0 : index
    %c0_7 = arith.constant 0 : index
    %6 = vector.load %arg2[%c3, %c0_6, %c0_7] : memref<4x12x4xbf16, #tpu.memory_space<vmem>>, vector<1x12x4xbf16>
    %7 = vector.shape_cast %6 : vector<1x12x4xbf16> to vector<12x4xbf16>
    %c0_8 = arith.constant 0 : index
    %c0_9 = arith.constant 0 : index
    %c0_10 = arith.constant 0 : index
    %8 = vector.load %arg1[%c0_8, %c0_9, %c0_10] : memref<1x290x12xbf16, #tpu.memory_space<vmem>>, vector<1x272x12xbf16>
    %9 = vector.shape_cast %8 : vector<1x272x12xbf16> to vector<272x12xbf16>
    %cst = arith.constant dense<0.000000e+00> : vector<272x4xf32>
    %10 = tpu.matmul %9, %1, %cst {dimension_numbers = #tpu.dot_dimension_numbers<[1], [0], [0], [1], [0, 0, 1, 1], [], []>} : vector<272x12xbf16>, vector<12x4xbf16>, vector<272x4xf32> -> vector<272x4xf32>
    %c0_11 = arith.constant 0 : index
    %c1_12 = arith.constant 1 : index
    %c0_13 = arith.constant 0 : index
    %11 = vector.load %arg1[%c0_11, %c1_12, %c0_13] : memref<1x290x12xbf16, #tpu.memory_space<vmem>>, vector<1x272x12xbf16>
    %12 = vector.shape_cast %11 : vector<1x272x12xbf16> to vector<272x12xbf16>
    %cst_14 = arith.constant dense<0.000000e+00> : vector<272x4xf32>
    %13 = tpu.matmul %12, %3, %cst_14 {dimension_numbers = #tpu.dot_dimension_numbers<[1], [0], [0], [1], [0, 0, 1, 1], [], []>} : vector<272x12xbf16>, vector<12x4xbf16>, vector<272x4xf32> -> vector<272x4xf32>
    %14 = arith.addf %10, %13 : vector<272x4xf32>
    %c0_15 = arith.constant 0 : index
    %c17 = arith.constant 17 : index
    %c0_16 = arith.constant 0 : index
    %15 = vector.load %arg1[%c0_15, %c17, %c0_16] : memref<1x290x12xbf16, #tpu.memory_space<vmem>>, vector<1x272x12xbf16>
    %16 = vector.shape_cast %15 : vector<1x272x12xbf16> to vector<272x12xbf16>
    %cst_17 = arith.constant dense<0.000000e+00> : vector<272x4xf32>
    %17 = tpu.matmul %16, %5, %cst_17 {dimension_numbers = #tpu.dot_dimension_numbers<[1], [0], [0], [1], [0, 0, 1, 1], [], []>} : vector<272x12xbf16>, vector<12x4xbf16>, vector<272x4xf32> -> vector<272x4xf32>
    %18 = arith.addf %14, %17 : vector<272x4xf32>
    %c0_18 = arith.constant 0 : index
    %c18 = arith.constant 18 : index
    %c0_19 = arith.constant 0 : index
    %19 = vector.load %arg1[%c0_18, %c18, %c0_19] : memref<1x290x12xbf16, #tpu.memory_space<vmem>>, vector<1x272x12xbf16>
    %20 = vector.shape_cast %19 : vector<1x272x12xbf16> to vector<272x12xbf16>
    %cst_20 = arith.constant dense<0.000000e+00> : vector<272x4xf32>
    %21 = tpu.matmul %20, %7, %cst_20 {dimension_numbers = #tpu.dot_dimension_numbers<[1], [0], [0], [1], [0, 0, 1, 1], [], []>} : vector<272x12xbf16>, vector<12x4xbf16>, vector<272x4xf32> -> vector<272x4xf32>
    %22 = arith.addf %18, %21 : vector<272x4xf32>
    %c0_21 = arith.constant 0 : index
    %c0_22 = arith.constant 0 : index
    %23 = vector.load %arg3[%c0_21, %c0_22] : memref<1x4xf32, #tpu.memory_space<vmem>>, vector<1x4xf32>
    %24 = vector.broadcast %23 : vector<1x4xf32> to vector<272x4xf32>
    %25 = arith.mulf %22, %24 : vector<272x4xf32>
    %c0_23 = arith.constant 0 : index
    %c0_24 = arith.constant 0 : index
    %26 = vector.load %arg4[%c0_23, %c0_24] : memref<1x4xf32, #tpu.memory_space<vmem>>, vector<1x4xf32>
    %27 = vector.broadcast %26 : vector<1x4xf32> to vector<272x4xf32>
    %28 = arith.addf %25, %27 : vector<272x4xf32>
    %cst_25 = arith.constant 0.000000e+00 : f32
    %29 = vector.broadcast %cst_25 : f32 to vector<272x4xf32>
    %30 = arith.maximumf %28, %29 : vector<272x4xf32>
    %31 = arith.truncf %30 : vector<272x4xf32> to vector<272x4xbf16>
    %c0_26 = arith.constant 0 : index
    %c0_27 = arith.constant 0 : index
    %c0_28 = arith.constant 0 : index
    %32 = vector.load %arg5[%c0_26, %c0_27, %c0_28] : memref<1x272x4xbf16, #tpu.memory_space<vmem>>, vector<1x272x4xbf16>
    %33 = vector.shape_cast %32 : vector<1x272x4xbf16> to vector<272x4xbf16>
    %34 = vector.shape_cast %31 : vector<272x4xbf16> to vector<1x272x4xbf16>
    tpu.vector_store %arg5[%c0_26, %c0_27, %c0_28], %34 {strides = array<i32>} : memref<1x272x4xbf16, #tpu.memory_space<vmem>>, vector<1x272x4xbf16>,
    return
  }
  func.func @transform_0(%arg0: i32) -> (i32, i32, i32) {
    %c0_i32 = arith.constant 0 : i32
    %c0_i32_0 = arith.constant 0 : i32
    %c0_i32_1 = arith.constant 0 : i32
    return %arg0, %c0_i32, %c0_i32_0 : i32, i32, i32
  }
  func.func @transform_1(%arg0: i32) -> (i32, i32, i32) {
    %c0_i32 = arith.constant 0 : i32
    %c0_i32_0 = arith.constant 0 : i32
    %c0_i32_1 = arith.constant 0 : i32
    %c0_i32_2 = arith.constant 0 : i32
    return %c0_i32, %c0_i32_0, %c0_i32_1 : i32, i32, i32
  }
  func.func @transform_2(%arg0: i32) -> (i32, i32) {
    %c0_i32 = arith.constant 0 : i32
    %c0_i32_0 = arith.constant 0 : i32
    %c0_i32_1 = arith.constant 0 : i32
    return %c0_i32, %c0_i32_0 : i32, i32
  }
  func.func @transform_3(%arg0: i32) -> (i32, i32) {
    %c0_i32 = arith.constant 0 : i32
    %c0_i32_0 = arith.constant 0 : i32
    %c0_i32_1 = arith.constant 0 : i32
    return %c0_i32, %c0_i32_0 : i32, i32
  }
  func.func @transform_4(%arg0: i32) -> (i32, i32, i32) {
    %c0_i32 = arith.constant 0 : i32
    %c0_i32_0 = arith.constant 0 : i32
    %c0_i32_1 = arith.constant 0 : i32
    return %arg0, %c0_i32, %c0_i32_0 : i32, i32, i32
  }
}

module attributes {stable_mosaic.version = 11 : i64} {
  func.func @_conv_bn_relu_kernel(%arg0: i32, %arg1: memref<1x82x16xbf16, #tpu.memory_space<vmem>>, %arg2: memref<4x16x8xbf16, #tpu.memory_space<vmem>>, %arg3: memref<1x8xf32, #tpu.memory_space<vmem>>, %arg4: memref<1x8xf32, #tpu.memory_space<vmem>>, %arg5: memref<1x72x8xbf16, #tpu.memory_space<vmem>>) attributes {dimension_semantics = [#tpu.dimension_semantics<parallel>], iteration_bounds = array<i64: 2>, scalar_prefetch = 0 : i64, scratch_operands = 0 : i64, tpu.core_type = #tpu.core_type<tc>, window_params = [{transform_indices = @transform_0, window_bounds = array<i64: 1, 82, 16>}, {pipeline_mode = #tpu.pipeline_mode<synchronous>, transform_indices = @transform_1, window_bounds = array<i64: 4, 16, 8>}, {pipeline_mode = #tpu.pipeline_mode<synchronous>, transform_indices = @transform_2, window_bounds = array<i64: 1, 8>}, {pipeline_mode = #tpu.pipeline_mode<synchronous>, transform_indices = @transform_3, window_bounds = array<i64: 1, 8>}, {transform_indices = @transform_4, window_bounds = array<i64: 1, 72, 8>}]} {
    %c0 = arith.constant 0 : index
    %c0_0 = arith.constant 0 : index
    %c0_1 = arith.constant 0 : index
    %0 = vector.load %arg2[%c0, %c0_0, %c0_1] : memref<4x16x8xbf16, #tpu.memory_space<vmem>>, vector<1x16x8xbf16>
    %1 = vector.shape_cast %0 : vector<1x16x8xbf16> to vector<16x8xbf16>
    %c1 = arith.constant 1 : index
    %c0_2 = arith.constant 0 : index
    %c0_3 = arith.constant 0 : index
    %2 = vector.load %arg2[%c1, %c0_2, %c0_3] : memref<4x16x8xbf16, #tpu.memory_space<vmem>>, vector<1x16x8xbf16>
    %3 = vector.shape_cast %2 : vector<1x16x8xbf16> to vector<16x8xbf16>
    %c2 = arith.constant 2 : index
    %c0_4 = arith.constant 0 : index
    %c0_5 = arith.constant 0 : index
    %4 = vector.load %arg2[%c2, %c0_4, %c0_5] : memref<4x16x8xbf16, #tpu.memory_space<vmem>>, vector<1x16x8xbf16>
    %5 = vector.shape_cast %4 : vector<1x16x8xbf16> to vector<16x8xbf16>
    %c3 = arith.constant 3 : index
    %c0_6 = arith.constant 0 : index
    %c0_7 = arith.constant 0 : index
    %6 = vector.load %arg2[%c3, %c0_6, %c0_7] : memref<4x16x8xbf16, #tpu.memory_space<vmem>>, vector<1x16x8xbf16>
    %7 = vector.shape_cast %6 : vector<1x16x8xbf16> to vector<16x8xbf16>
    %c0_8 = arith.constant 0 : index
    %c0_9 = arith.constant 0 : index
    %c0_10 = arith.constant 0 : index
    %8 = vector.load %arg1[%c0_8, %c0_9, %c0_10] : memref<1x82x16xbf16, #tpu.memory_space<vmem>>, vector<1x72x16xbf16>
    %9 = vector.shape_cast %8 : vector<1x72x16xbf16> to vector<72x16xbf16>
    %cst = arith.constant dense<0.000000e+00> : vector<72x8xf32>
    %10 = tpu.matmul %9, %1, %cst {dimension_numbers = #tpu.dot_dimension_numbers<[1], [0], [0], [1], [0, 0, 1, 1], [], []>} : vector<72x16xbf16>, vector<16x8xbf16>, vector<72x8xf32> -> vector<72x8xf32>
    %c0_11 = arith.constant 0 : index
    %c1_12 = arith.constant 1 : index
    %c0_13 = arith.constant 0 : index
    %11 = vector.load %arg1[%c0_11, %c1_12, %c0_13] : memref<1x82x16xbf16, #tpu.memory_space<vmem>>, vector<1x72x16xbf16>
    %12 = vector.shape_cast %11 : vector<1x72x16xbf16> to vector<72x16xbf16>
    %cst_14 = arith.constant dense<0.000000e+00> : vector<72x8xf32>
    %13 = tpu.matmul %12, %3, %cst_14 {dimension_numbers = #tpu.dot_dimension_numbers<[1], [0], [0], [1], [0, 0, 1, 1], [], []>} : vector<72x16xbf16>, vector<16x8xbf16>, vector<72x8xf32> -> vector<72x8xf32>
    %14 = arith.addf %10, %13 : vector<72x8xf32>
    %c0_15 = arith.constant 0 : index
    %c9 = arith.constant 9 : index
    %c0_16 = arith.constant 0 : index
    %15 = vector.load %arg1[%c0_15, %c9, %c0_16] : memref<1x82x16xbf16, #tpu.memory_space<vmem>>, vector<1x72x16xbf16>
    %16 = vector.shape_cast %15 : vector<1x72x16xbf16> to vector<72x16xbf16>
    %cst_17 = arith.constant dense<0.000000e+00> : vector<72x8xf32>
    %17 = tpu.matmul %16, %5, %cst_17 {dimension_numbers = #tpu.dot_dimension_numbers<[1], [0], [0], [1], [0, 0, 1, 1], [], []>} : vector<72x16xbf16>, vector<16x8xbf16>, vector<72x8xf32> -> vector<72x8xf32>
    %18 = arith.addf %14, %17 : vector<72x8xf32>
    %c0_18 = arith.constant 0 : index
    %c10 = arith.constant 10 : index
    %c0_19 = arith.constant 0 : index
    %19 = vector.load %arg1[%c0_18, %c10, %c0_19] : memref<1x82x16xbf16, #tpu.memory_space<vmem>>, vector<1x72x16xbf16>
    %20 = vector.shape_cast %19 : vector<1x72x16xbf16> to vector<72x16xbf16>
    %cst_20 = arith.constant dense<0.000000e+00> : vector<72x8xf32>
    %21 = tpu.matmul %20, %7, %cst_20 {dimension_numbers = #tpu.dot_dimension_numbers<[1], [0], [0], [1], [0, 0, 1, 1], [], []>} : vector<72x16xbf16>, vector<16x8xbf16>, vector<72x8xf32> -> vector<72x8xf32>
    %22 = arith.addf %18, %21 : vector<72x8xf32>
    %c0_21 = arith.constant 0 : index
    %c0_22 = arith.constant 0 : index
    %23 = vector.load %arg3[%c0_21, %c0_22] : memref<1x8xf32, #tpu.memory_space<vmem>>, vector<1x8xf32>
    %24 = vector.broadcast %23 : vector<1x8xf32> to vector<72x8xf32>
    %25 = arith.mulf %22, %24 : vector<72x8xf32>
    %c0_23 = arith.constant 0 : index
    %c0_24 = arith.constant 0 : index
    %26 = vector.load %arg4[%c0_23, %c0_24] : memref<1x8xf32, #tpu.memory_space<vmem>>, vector<1x8xf32>
    %27 = vector.broadcast %26 : vector<1x8xf32> to vector<72x8xf32>
    %28 = arith.addf %25, %27 : vector<72x8xf32>
    %cst_25 = arith.constant 0.000000e+00 : f32
    %29 = vector.broadcast %cst_25 : f32 to vector<72x8xf32>
    %30 = arith.maximumf %28, %29 : vector<72x8xf32>
    %31 = arith.truncf %30 : vector<72x8xf32> to vector<72x8xbf16>
    %c0_26 = arith.constant 0 : index
    %c0_27 = arith.constant 0 : index
    %c0_28 = arith.constant 0 : index
    %32 = vector.load %arg5[%c0_26, %c0_27, %c0_28] : memref<1x72x8xbf16, #tpu.memory_space<vmem>>, vector<1x72x8xbf16>
    %33 = vector.shape_cast %32 : vector<1x72x8xbf16> to vector<72x8xbf16>
    %34 = vector.shape_cast %31 : vector<72x8xbf16> to vector<1x72x8xbf16>
    tpu.vector_store %arg5[%c0_26, %c0_27, %c0_28], %34 {strides = array<i32>} : memref<1x72x8xbf16, #tpu.memory_space<vmem>>, vector<1x72x8xbf16>,
    return
  }
  func.func @transform_0(%arg0: i32) -> (i32, i32, i32) {
    %c0_i32 = arith.constant 0 : i32
    %c0_i32_0 = arith.constant 0 : i32
    %c0_i32_1 = arith.constant 0 : i32
    return %arg0, %c0_i32, %c0_i32_0 : i32, i32, i32
  }
  func.func @transform_1(%arg0: i32) -> (i32, i32, i32) {
    %c0_i32 = arith.constant 0 : i32
    %c0_i32_0 = arith.constant 0 : i32
    %c0_i32_1 = arith.constant 0 : i32
    %c0_i32_2 = arith.constant 0 : i32
    return %c0_i32, %c0_i32_0, %c0_i32_1 : i32, i32, i32
  }
  func.func @transform_2(%arg0: i32) -> (i32, i32) {
    %c0_i32 = arith.constant 0 : i32
    %c0_i32_0 = arith.constant 0 : i32
    %c0_i32_1 = arith.constant 0 : i32
    return %c0_i32, %c0_i32_0 : i32, i32
  }
  func.func @transform_3(%arg0: i32) -> (i32, i32) {
    %c0_i32 = arith.constant 0 : i32
    %c0_i32_0 = arith.constant 0 : i32
    %c0_i32_1 = arith.constant 0 : i32
    return %c0_i32, %c0_i32_0 : i32, i32
  }
  func.func @transform_4(%arg0: i32) -> (i32, i32, i32) {
    %c0_i32 = arith.constant 0 : i32
    %c0_i32_0 = arith.constant 0 : i32
    %c0_i32_1 = arith.constant 0 : i32
    return %arg0, %c0_i32, %c0_i32_0 : i32, i32, i32
  }
}

module attributes {stable_mosaic.version = 11 : i64} {
  func.func @_conv_bn_relu_kernel(%arg0: i32, %arg1: memref<1x26x32xbf16, #tpu.memory_space<vmem>>, %arg2: memref<4x32x16xbf16, #tpu.memory_space<vmem>>, %arg3: memref<1x16xf32, #tpu.memory_space<vmem>>, %arg4: memref<1x16xf32, #tpu.memory_space<vmem>>, %arg5: memref<1x20x16xbf16, #tpu.memory_space<vmem>>) attributes {dimension_semantics = [#tpu.dimension_semantics<parallel>], iteration_bounds = array<i64: 2>, scalar_prefetch = 0 : i64, scratch_operands = 0 : i64, tpu.core_type = #tpu.core_type<tc>, window_params = [{transform_indices = @transform_0, window_bounds = array<i64: 1, 26, 32>}, {pipeline_mode = #tpu.pipeline_mode<synchronous>, transform_indices = @transform_1, window_bounds = array<i64: 4, 32, 16>}, {pipeline_mode = #tpu.pipeline_mode<synchronous>, transform_indices = @transform_2, window_bounds = array<i64: 1, 16>}, {pipeline_mode = #tpu.pipeline_mode<synchronous>, transform_indices = @transform_3, window_bounds = array<i64: 1, 16>}, {transform_indices = @transform_4, window_bounds = array<i64: 1, 20, 16>}]} {
    %c0 = arith.constant 0 : index
    %c0_0 = arith.constant 0 : index
    %c0_1 = arith.constant 0 : index
    %0 = vector.load %arg2[%c0, %c0_0, %c0_1] : memref<4x32x16xbf16, #tpu.memory_space<vmem>>, vector<1x32x16xbf16>
    %1 = vector.shape_cast %0 : vector<1x32x16xbf16> to vector<32x16xbf16>
    %c1 = arith.constant 1 : index
    %c0_2 = arith.constant 0 : index
    %c0_3 = arith.constant 0 : index
    %2 = vector.load %arg2[%c1, %c0_2, %c0_3] : memref<4x32x16xbf16, #tpu.memory_space<vmem>>, vector<1x32x16xbf16>
    %3 = vector.shape_cast %2 : vector<1x32x16xbf16> to vector<32x16xbf16>
    %c2 = arith.constant 2 : index
    %c0_4 = arith.constant 0 : index
    %c0_5 = arith.constant 0 : index
    %4 = vector.load %arg2[%c2, %c0_4, %c0_5] : memref<4x32x16xbf16, #tpu.memory_space<vmem>>, vector<1x32x16xbf16>
    %5 = vector.shape_cast %4 : vector<1x32x16xbf16> to vector<32x16xbf16>
    %c3 = arith.constant 3 : index
    %c0_6 = arith.constant 0 : index
    %c0_7 = arith.constant 0 : index
    %6 = vector.load %arg2[%c3, %c0_6, %c0_7] : memref<4x32x16xbf16, #tpu.memory_space<vmem>>, vector<1x32x16xbf16>
    %7 = vector.shape_cast %6 : vector<1x32x16xbf16> to vector<32x16xbf16>
    %c0_8 = arith.constant 0 : index
    %c0_9 = arith.constant 0 : index
    %c0_10 = arith.constant 0 : index
    %8 = vector.load %arg1[%c0_8, %c0_9, %c0_10] : memref<1x26x32xbf16, #tpu.memory_space<vmem>>, vector<1x20x32xbf16>
    %9 = vector.shape_cast %8 : vector<1x20x32xbf16> to vector<20x32xbf16>
    %cst = arith.constant dense<0.000000e+00> : vector<20x16xf32>
    %10 = tpu.matmul %9, %1, %cst {dimension_numbers = #tpu.dot_dimension_numbers<[1], [0], [0], [1], [0, 0, 1, 1], [], []>} : vector<20x32xbf16>, vector<32x16xbf16>, vector<20x16xf32> -> vector<20x16xf32>
    %c0_11 = arith.constant 0 : index
    %c1_12 = arith.constant 1 : index
    %c0_13 = arith.constant 0 : index
    %11 = vector.load %arg1[%c0_11, %c1_12, %c0_13] : memref<1x26x32xbf16, #tpu.memory_space<vmem>>, vector<1x20x32xbf16>
    %12 = vector.shape_cast %11 : vector<1x20x32xbf16> to vector<20x32xbf16>
    %cst_14 = arith.constant dense<0.000000e+00> : vector<20x16xf32>
    %13 = tpu.matmul %12, %3, %cst_14 {dimension_numbers = #tpu.dot_dimension_numbers<[1], [0], [0], [1], [0, 0, 1, 1], [], []>} : vector<20x32xbf16>, vector<32x16xbf16>, vector<20x16xf32> -> vector<20x16xf32>
    %14 = arith.addf %10, %13 : vector<20x16xf32>
    %c0_15 = arith.constant 0 : index
    %c5 = arith.constant 5 : index
    %c0_16 = arith.constant 0 : index
    %15 = vector.load %arg1[%c0_15, %c5, %c0_16] : memref<1x26x32xbf16, #tpu.memory_space<vmem>>, vector<1x20x32xbf16>
    %16 = vector.shape_cast %15 : vector<1x20x32xbf16> to vector<20x32xbf16>
    %cst_17 = arith.constant dense<0.000000e+00> : vector<20x16xf32>
    %17 = tpu.matmul %16, %5, %cst_17 {dimension_numbers = #tpu.dot_dimension_numbers<[1], [0], [0], [1], [0, 0, 1, 1], [], []>} : vector<20x32xbf16>, vector<32x16xbf16>, vector<20x16xf32> -> vector<20x16xf32>
    %18 = arith.addf %14, %17 : vector<20x16xf32>
    %c0_18 = arith.constant 0 : index
    %c6 = arith.constant 6 : index
    %c0_19 = arith.constant 0 : index
    %19 = vector.load %arg1[%c0_18, %c6, %c0_19] : memref<1x26x32xbf16, #tpu.memory_space<vmem>>, vector<1x20x32xbf16>
    %20 = vector.shape_cast %19 : vector<1x20x32xbf16> to vector<20x32xbf16>
    %cst_20 = arith.constant dense<0.000000e+00> : vector<20x16xf32>
    %21 = tpu.matmul %20, %7, %cst_20 {dimension_numbers = #tpu.dot_dimension_numbers<[1], [0], [0], [1], [0, 0, 1, 1], [], []>} : vector<20x32xbf16>, vector<32x16xbf16>, vector<20x16xf32> -> vector<20x16xf32>
    %22 = arith.addf %18, %21 : vector<20x16xf32>
    %c0_21 = arith.constant 0 : index
    %c0_22 = arith.constant 0 : index
    %23 = vector.load %arg3[%c0_21, %c0_22] : memref<1x16xf32, #tpu.memory_space<vmem>>, vector<1x16xf32>
    %24 = vector.broadcast %23 : vector<1x16xf32> to vector<20x16xf32>
    %25 = arith.mulf %22, %24 : vector<20x16xf32>
    %c0_23 = arith.constant 0 : index
    %c0_24 = arith.constant 0 : index
    %26 = vector.load %arg4[%c0_23, %c0_24] : memref<1x16xf32, #tpu.memory_space<vmem>>, vector<1x16xf32>
    %27 = vector.broadcast %26 : vector<1x16xf32> to vector<20x16xf32>
    %28 = arith.addf %25, %27 : vector<20x16xf32>
    %cst_25 = arith.constant 0.000000e+00 : f32
    %29 = vector.broadcast %cst_25 : f32 to vector<20x16xf32>
    %30 = arith.maximumf %28, %29 : vector<20x16xf32>
    %31 = arith.truncf %30 : vector<20x16xf32> to vector<20x16xbf16>
    %c0_26 = arith.constant 0 : index
    %c0_27 = arith.constant 0 : index
    %c0_28 = arith.constant 0 : index
    %32 = vector.load %arg5[%c0_26, %c0_27, %c0_28] : memref<1x20x16xbf16, #tpu.memory_space<vmem>>, vector<1x20x16xbf16>
    %33 = vector.shape_cast %32 : vector<1x20x16xbf16> to vector<20x16xbf16>
    %34 = vector.shape_cast %31 : vector<20x16xbf16> to vector<1x20x16xbf16>
    tpu.vector_store %arg5[%c0_26, %c0_27, %c0_28], %34 {strides = array<i32>} : memref<1x20x16xbf16, #tpu.memory_space<vmem>>, vector<1x20x16xbf16>,
    return
  }
  func.func @transform_0(%arg0: i32) -> (i32, i32, i32) {
    %c0_i32 = arith.constant 0 : i32
    %c0_i32_0 = arith.constant 0 : i32
    %c0_i32_1 = arith.constant 0 : i32
    return %arg0, %c0_i32, %c0_i32_0 : i32, i32, i32
  }
  func.func @transform_1(%arg0: i32) -> (i32, i32, i32) {
    %c0_i32 = arith.constant 0 : i32
    %c0_i32_0 = arith.constant 0 : i32
    %c0_i32_1 = arith.constant 0 : i32
    %c0_i32_2 = arith.constant 0 : i32
    return %c0_i32, %c0_i32_0, %c0_i32_1 : i32, i32, i32
  }
  func.func @transform_2(%arg0: i32) -> (i32, i32) {
    %c0_i32 = arith.constant 0 : i32
    %c0_i32_0 = arith.constant 0 : i32
    %c0_i32_1 = arith.constant 0 : i32
    return %c0_i32, %c0_i32_0 : i32, i32
  }
  func.func @transform_3(%arg0: i32) -> (i32, i32) {
    %c0_i32 = arith.constant 0 : i32
    %c0_i32_0 = arith.constant 0 : i32
    %c0_i32_1 = arith.constant 0 : i32
    return %c0_i32, %c0_i32_0 : i32, i32
  }
  func.func @transform_4(%arg0: i32) -> (i32, i32, i32) {
    %c0_i32 = arith.constant 0 : i32
    %c0_i32_0 = arith.constant 0 : i32
    %c0_i32_1 = arith.constant 0 : i32
    return %arg0, %c0_i32, %c0_i32_0 : i32, i32, i32
  }
}

module attributes {stable_mosaic.version = 11 : i64} {
  func.func @_conv_bn_relu_proj_kernel(%arg0: i32, %arg1: memref<1x10x64xbf16, #tpu.memory_space<vmem>>, %arg2: memref<4x64x32xbf16, #tpu.memory_space<vmem>>, %arg3: memref<1x32xf32, #tpu.memory_space<vmem>>, %arg4: memref<1x32xf32, #tpu.memory_space<vmem>>, %arg5: memref<32x32xbf16, #tpu.memory_space<vmem>>, %arg6: memref<1x32xf32, #tpu.memory_space<vmem>>, %arg7: memref<1x6x32xf32, #tpu.memory_space<vmem>>) attributes {dimension_semantics = [#tpu.dimension_semantics<parallel>], iteration_bounds = array<i64: 2>, scalar_prefetch = 0 : i64, scratch_operands = 0 : i64, tpu.core_type = #tpu.core_type<tc>, window_params = [{transform_indices = @transform_0, window_bounds = array<i64: 1, 10, 64>}, {pipeline_mode = #tpu.pipeline_mode<synchronous>, transform_indices = @transform_1, window_bounds = array<i64: 4, 64, 32>}, {pipeline_mode = #tpu.pipeline_mode<synchronous>, transform_indices = @transform_2, window_bounds = array<i64: 1, 32>}, {pipeline_mode = #tpu.pipeline_mode<synchronous>, transform_indices = @transform_3, window_bounds = array<i64: 1, 32>}, {pipeline_mode = #tpu.pipeline_mode<synchronous>, transform_indices = @transform_4, window_bounds = array<i64: 32, 32>}, {pipeline_mode = #tpu.pipeline_mode<synchronous>, transform_indices = @transform_5, window_bounds = array<i64: 1, 32>}, {transform_indices = @transform_6, window_bounds = array<i64: 1, 6, 32>}]} {
    %c0 = arith.constant 0 : index
    %c0_0 = arith.constant 0 : index
    %c0_1 = arith.constant 0 : index
    %0 = vector.load %arg2[%c0, %c0_0, %c0_1] : memref<4x64x32xbf16, #tpu.memory_space<vmem>>, vector<1x64x32xbf16>
    %1 = vector.shape_cast %0 : vector<1x64x32xbf16> to vector<64x32xbf16>
    %c1 = arith.constant 1 : index
    %c0_2 = arith.constant 0 : index
    %c0_3 = arith.constant 0 : index
    %2 = vector.load %arg2[%c1, %c0_2, %c0_3] : memref<4x64x32xbf16, #tpu.memory_space<vmem>>, vector<1x64x32xbf16>
    %3 = vector.shape_cast %2 : vector<1x64x32xbf16> to vector<64x32xbf16>
    %c2 = arith.constant 2 : index
    %c0_4 = arith.constant 0 : index
    %c0_5 = arith.constant 0 : index
    %4 = vector.load %arg2[%c2, %c0_4, %c0_5] : memref<4x64x32xbf16, #tpu.memory_space<vmem>>, vector<1x64x32xbf16>
    %5 = vector.shape_cast %4 : vector<1x64x32xbf16> to vector<64x32xbf16>
    %c3 = arith.constant 3 : index
    %c0_6 = arith.constant 0 : index
    %c0_7 = arith.constant 0 : index
    %6 = vector.load %arg2[%c3, %c0_6, %c0_7] : memref<4x64x32xbf16, #tpu.memory_space<vmem>>, vector<1x64x32xbf16>
    %7 = vector.shape_cast %6 : vector<1x64x32xbf16> to vector<64x32xbf16>
    %c0_8 = arith.constant 0 : index
    %c0_9 = arith.constant 0 : index
    %c0_10 = arith.constant 0 : index
    %8 = vector.load %arg1[%c0_8, %c0_9, %c0_10] : memref<1x10x64xbf16, #tpu.memory_space<vmem>>, vector<1x6x64xbf16>
    %9 = vector.shape_cast %8 : vector<1x6x64xbf16> to vector<6x64xbf16>
    %cst = arith.constant dense<0.000000e+00> : vector<6x32xf32>
    %10 = tpu.matmul %9, %1, %cst {dimension_numbers = #tpu.dot_dimension_numbers<[1], [0], [0], [1], [0, 0, 1, 1], [], []>} : vector<6x64xbf16>, vector<64x32xbf16>, vector<6x32xf32> -> vector<6x32xf32>
    %c0_11 = arith.constant 0 : index
    %c1_12 = arith.constant 1 : index
    %c0_13 = arith.constant 0 : index
    %11 = vector.load %arg1[%c0_11, %c1_12, %c0_13] : memref<1x10x64xbf16, #tpu.memory_space<vmem>>, vector<1x6x64xbf16>
    %12 = vector.shape_cast %11 : vector<1x6x64xbf16> to vector<6x64xbf16>
    %cst_14 = arith.constant dense<0.000000e+00> : vector<6x32xf32>
    %13 = tpu.matmul %12, %3, %cst_14 {dimension_numbers = #tpu.dot_dimension_numbers<[1], [0], [0], [1], [0, 0, 1, 1], [], []>} : vector<6x64xbf16>, vector<64x32xbf16>, vector<6x32xf32> -> vector<6x32xf32>
    %14 = arith.addf %10, %13 : vector<6x32xf32>
    %c0_15 = arith.constant 0 : index
    %c3_16 = arith.constant 3 : index
    %c0_17 = arith.constant 0 : index
    %15 = vector.load %arg1[%c0_15, %c3_16, %c0_17] : memref<1x10x64xbf16, #tpu.memory_space<vmem>>, vector<1x6x64xbf16>
    %16 = vector.shape_cast %15 : vector<1x6x64xbf16> to vector<6x64xbf16>
    %cst_18 = arith.constant dense<0.000000e+00> : vector<6x32xf32>
    %17 = tpu.matmul %16, %5, %cst_18 {dimension_numbers = #tpu.dot_dimension_numbers<[1], [0], [0], [1], [0, 0, 1, 1], [], []>} : vector<6x64xbf16>, vector<64x32xbf16>, vector<6x32xf32> -> vector<6x32xf32>
    %18 = arith.addf %14, %17 : vector<6x32xf32>
    %c0_19 = arith.constant 0 : index
    %c4 = arith.constant 4 : index
    %c0_20 = arith.constant 0 : index
    %19 = vector.load %arg1[%c0_19, %c4, %c0_20] : memref<1x10x64xbf16, #tpu.memory_space<vmem>>, vector<1x6x64xbf16>
    %20 = vector.shape_cast %19 : vector<1x6x64xbf16> to vector<6x64xbf16>
    %cst_21 = arith.constant dense<0.000000e+00> : vector<6x32xf32>
    %21 = tpu.matmul %20, %7, %cst_21 {dimension_numbers = #tpu.dot_dimension_numbers<[1], [0], [0], [1], [0, 0, 1, 1], [], []>} : vector<6x64xbf16>, vector<64x32xbf16>, vector<6x32xf32> -> vector<6x32xf32>
    %22 = arith.addf %18, %21 : vector<6x32xf32>
    %c0_22 = arith.constant 0 : index
    %c0_23 = arith.constant 0 : index
    %23 = vector.load %arg3[%c0_22, %c0_23] : memref<1x32xf32, #tpu.memory_space<vmem>>, vector<1x32xf32>
    %24 = vector.broadcast %23 : vector<1x32xf32> to vector<6x32xf32>
    %25 = arith.mulf %22, %24 : vector<6x32xf32>
    %c0_24 = arith.constant 0 : index
    %c0_25 = arith.constant 0 : index
    %26 = vector.load %arg4[%c0_24, %c0_25] : memref<1x32xf32, #tpu.memory_space<vmem>>, vector<1x32xf32>
    %27 = vector.broadcast %26 : vector<1x32xf32> to vector<6x32xf32>
    %28 = arith.addf %25, %27 : vector<6x32xf32>
    %cst_26 = arith.constant 0.000000e+00 : f32
    %29 = vector.broadcast %cst_26 : f32 to vector<6x32xf32>
    %30 = arith.maximumf %28, %29 : vector<6x32xf32>
    %31 = arith.truncf %30 : vector<6x32xf32> to vector<6x32xbf16>
    %c0_27 = arith.constant 0 : index
    %c0_28 = arith.constant 0 : index
    %32 = vector.load %arg5[%c0_27, %c0_28] : memref<32x32xbf16, #tpu.memory_space<vmem>>, vector<32x32xbf16>
    %cst_29 = arith.constant dense<0.000000e+00> : vector<6x32xf32>
    %33 = tpu.matmul %31, %32, %cst_29 {dimension_numbers = #tpu.dot_dimension_numbers<[1], [0], [0], [1], [0, 0, 1, 1], [], []>} : vector<6x32xbf16>, vector<32x32xbf16>, vector<6x32xf32> -> vector<6x32xf32>
    %c0_30 = arith.constant 0 : index
    %c0_31 = arith.constant 0 : index
    %34 = vector.load %arg6[%c0_30, %c0_31] : memref<1x32xf32, #tpu.memory_space<vmem>>, vector<1x32xf32>
    %35 = vector.broadcast %34 : vector<1x32xf32> to vector<6x32xf32>
    %36 = arith.addf %33, %35 : vector<6x32xf32>
    %c0_32 = arith.constant 0 : index
    %c0_33 = arith.constant 0 : index
    %c0_34 = arith.constant 0 : index
    %37 = vector.load %arg7[%c0_32, %c0_33, %c0_34] : memref<1x6x32xf32, #tpu.memory_space<vmem>>, vector<1x6x32xf32>
    %38 = vector.shape_cast %37 : vector<1x6x32xf32> to vector<6x32xf32>
    %39 = vector.shape_cast %36 : vector<6x32xf32> to vector<1x6x32xf32>
    tpu.vector_store %arg7[%c0_32, %c0_33, %c0_34], %39 {strides = array<i32>} : memref<1x6x32xf32, #tpu.memory_space<vmem>>, vector<1x6x32xf32>,
    return
  }
  func.func @transform_0(%arg0: i32) -> (i32, i32, i32) {
    %c0_i32 = arith.constant 0 : i32
    %c0_i32_0 = arith.constant 0 : i32
    %c0_i32_1 = arith.constant 0 : i32
    return %arg0, %c0_i32, %c0_i32_0 : i32, i32, i32
  }
  func.func @transform_1(%arg0: i32) -> (i32, i32, i32) {
    %c0_i32 = arith.constant 0 : i32
    %c0_i32_0 = arith.constant 0 : i32
    %c0_i32_1 = arith.constant 0 : i32
    %c0_i32_2 = arith.constant 0 : i32
    return %c0_i32, %c0_i32_0, %c0_i32_1 : i32, i32, i32
  }
  func.func @transform_2(%arg0: i32) -> (i32, i32) {
    %c0_i32 = arith.constant 0 : i32
    %c0_i32_0 = arith.constant 0 : i32
    %c0_i32_1 = arith.constant 0 : i32
    return %c0_i32, %c0_i32_0 : i32, i32
  }
  func.func @transform_3(%arg0: i32) -> (i32, i32) {
    %c0_i32 = arith.constant 0 : i32
    %c0_i32_0 = arith.constant 0 : i32
    %c0_i32_1 = arith.constant 0 : i32
    return %c0_i32, %c0_i32_0 : i32, i32
  }
  func.func @transform_4(%arg0: i32) -> (i32, i32) {
    %c0_i32 = arith.constant 0 : i32
    %c0_i32_0 = arith.constant 0 : i32
    %c0_i32_1 = arith.constant 0 : i32
    return %c0_i32, %c0_i32_0 : i32, i32
  }
  func.func @transform_5(%arg0: i32) -> (i32, i32) {
    %c0_i32 = arith.constant 0 : i32
    %c0_i32_0 = arith.constant 0 : i32
    %c0_i32_1 = arith.constant 0 : i32
    return %c0_i32, %c0_i32_0 : i32, i32
  }
  func.func @transform_6(%arg0: i32) -> (i32, i32, i32) {
    %c0_i32 = arith.constant 0 : i32
    %c0_i32_0 = arith.constant 0 : i32
    %c0_i32_1 = arith.constant 0 : i32
    return %arg0, %c0_i32, %c0_i32_0 : i32, i32, i32
  }
}

</mosaic_0001>

<bundles_post_ra>
// kernel: conv_stem_forward.4
= control target key start
LH: loop header
LB: loop body
LE: loop exit
PB: predicated region body
PF: predicated region fallthrough
CT: control target
= control target key end

     0   :  { %s2718_s15 = smov 0   ;;  %s3304_s0 = inlined_call_operand.vmem [shape: bf16[2,290,12], index: 0, kind: input, shape index: {}]   ;;  %s3305_s1 = inlined_call_operand.vmem [shape: bf16[4,12,4], index: 1, kind: input, shape index: {}]   ;;  %s3306_s2 = inlined_call_operand.vmem [shape: f32[1,4], index: 2, kind: input, shape index: {}]   ;;  %s3307_s3 = inlined_call_operand.vmem [shape: f32[1,4], index: 3, kind: input, shape index: {}]   ;;  %s3308_s4 = inlined_call_operand.vmem [shape: bf16[2,272,4], index: 4, kind: output, shape index: {}]  }
   0x1 LB: > { %s2084_s16 = sadd.s32 4294967295, %s2689_s15   ;;  %p2088_p0 = scmp.ge.s32.totalorder %s2689_s15, 1  ;;  %s2689_s15 = sphi %s2718_s15, %s14_s15  }
   0x2   : > { %p162_p1 = scmp.lt.s32.totalorder %s2689_s15, 3 }
   0x4   : > { %p163_p2 = pnand %p2088_p0, %p162_p1 }
   0x5   : > { %p188_p3 = scmp.lt.s32.totalorder (!%p163_p2), %s2084_s16, 1 }
   0x6   : > { %166 = sbr.rel (%p163_p2) target bundleno = 497 (0x1f1), region = 36 }
   0xb   : > { %vm531_vm0 = vcmask 1045504   ;;  %v2691_v0 = vmov 0.0   ;;  %v2642_v1 = vld [vmem:[%s3305_s1] sm:$0x3f]   ;;  %vm2692_vm1 = vmmov 0   ;;  %s3310_s16 = smov (!%p188_p3, %s2084_s16), 1 }
   0xc   : > { %2420 = vmatprep.subr.bf16.mxu1 %v2691_v0  ;;  %2350 = vmatprep.subr.bf16.mxu0 %v2691_v0  ;;  %v2643_v2 = vld [vmem:[%s3305_s1 + $0x8] sm:$0x3f]   ;;  %v744_v3 = vsel %vm531_vm0, %v2642_v1, 0  ;;  %s2630_s21 = smul.u32 148, %s3310_s16  ;;  %v2647_v5 = vld [vmem:[%s3305_s1 + $0x18] sm:$0x3f]  }
   0xd   : > { %2422 = vmatprep.mubr.msk.bf16.mxu1 %vm2692_vm1, %v2691_v0  ;;  %2352 = vmatprep.mubr.msk.bf16.mxu0 %vm2692_vm1, %v2691_v0  ;;  %v533_v4 = vsel %vm531_vm0, %v2643_v2, 0  ;;  %vm479_vm2 = vcmask 97280   ;;  %v1537_v7 = vsel %vm531_vm0, %v2647_v5, 0  ;;  %v2646_v12 = vld [vmem:[%s3305_s1 + $0x10] sm:$0x3f]   ;;  %vm1444_vm4 = vcmask 1046528  }
   0xe   : > { %2421 = vmatpush3.bf16.msra.mxu1 %v744_v3  ;;  %2351 = vmatpush3.bf16.msra.mxu0 %v533_v4  ;;  %s2751_s26 = scalar_lea.vmem %s3304_s0, %s2630_s21  ;;  %vm333_vm3 = vsmask.f32 7424  ;;  %v1235_v19 = vsel %vm531_vm0, %v2646_v12, 0  ;;  %s2631_s7 = smul.u32 136, %s3310_s16  ;;  %vm1994_vm5 = vcmask 27648  }
   0xf   : > { %2560 = vmatprep.subr.bf16.mxu1 %v2691_v0  ;;  %2490 = vmatprep.subr.bf16.mxu0 %v2691_v0  ;;  %v2644_v6 = vld [vmem:[%s2751_s26] sm:$0xff]   ;;  %v2645_v8 = vld [vmem:[%s2751_s26 + $0x8] sm:$0xff]   ;;  %v2648_v13 = vld [vmem:[%s2751_s26 + $0x10] sm:$0xff]  }
  0x10   : > { %v335_v9 = vshrl.u32 %v2644_v6, 16  ;;  %v337_v10 = vshll.u32 %v2644_v6, 16  ;;  %v342_v11 = vshll.u32 %v2645_v8, 16  ;;  %v346_v17 = vshrl.u32 %v2645_v8, 16  ;;  %v2649_v23 = vld [vmem:[%s2751_s26 + $0x18] sm:$0xff]   ;;  %v2650_v29 = vld [vmem:[%s2751_s26 + $0x20] sm:$0xff]   ;;  %s3135_s10 = scalar_lea.vmem %s3308_s4, %s2631_s7 }
  0x11   : > { %2423 = vmatmul.mubr.msk.bf16.vlgmr.msra.gmra.mxu1 %vm479_vm2, %v2644_v6  ;;  %v350_v18 = vshll.u32 %v2648_v13, 16  ;;  %v354_v25 = vshrl.u32 %v2648_v13, 16  ;;  %v358_v26 = vshll.u32 %v2649_v23, 16  ;;  %v362_v31 = vshrl.u32 %v2649_v23, 16  ;;  %v2651_v35 = vld [vmem:[%s2751_s26 + $0x28] sm:$0xff]   ;;  %v2652_v39 = vld [vmem:[%s2751_s26 + $0x30] sm:$0xff]  }
  0x12   : > { %2561 = vmatpush3.bf16.msra.mxu1 %v1537_v7  ;;  %2426 = vmatprep.mubr.msk.bf16.mxu1 %vm2692_vm1, %v2691_v0  ;;  %v339_v14 = vrot.slane %v337_v10, 1  ;;  %v344_v15 = vrot.slane %v342_v11, 1  ;;  %v366_v32 = vshll.u32 %v2650_v29, 16  ;;  %v370_v37 = vshrl.u32 %v2650_v29, 16  ;;  %v2653_v47 = vld [vmem:[%s2751_s26 + $0x38] sm:$0xff]   ;;  %v2654_v53 = vld [vmem:[%s2751_s26 + $0x40] sm:$0xff]  }
  0x13   : > { %v352_v22 = vrot.slane %v350_v18, 1  ;;  %v360_v28 = vrot.slane %v358_v26, 1  ;;  %v374_v38 = vshll.u32 %v2651_v35, 16  ;;  %v378_v42 = vshrl.u32 %v2651_v35, 16  ;;  %v2655_v59 = vld [vmem:[%s2751_s26 + $0x48] sm:$0xff]   ;;  %v2656_v2 = vld [vmem:[%s2751_s26 + $0x50] sm:$0xff]  }
  0x14   : > { %v340_v16 = vor.u32 %v339_v14, %v335_v9  ;;  %v348_v21 = vor.u32 %v346_v17, %v344_v15  ;;  %v368_v34 = vrot.slane %v366_v32, 1  ;;  %v382_v43 = vshll.u32 %v2652_v39, 16  ;;  %v2658_v14 = vld [vmem:[%s2751_s26 + $0x60] sm:$0xff]   ;;  %v2660_v26 = vld [vmem:[%s2751_s26 + $0x70] sm:$0xff]   ;;  %v2661_v32 = vld [vmem:[%s2751_s26 + $0x78] sm:$0xff]  }
  0x15   : > { %v356_v27 = vor.u32 %v354_v25, %v352_v22  ;;  %v364_v33 = vor.u32 %v362_v31, %v360_v28  ;;  %v376_v41 = vrot.slane %v374_v38, 1  ;;  %v386_v49 = vshrl.u32 %v2652_v39, 16  ;;  %v2662_v38 = vld [vmem:[%s2751_s26 + $0x80] sm:$0xff]  }
  0x16   : > { %v345_v20 = vsel %vm333_vm3, %v340_v16, %v344_v15  ;;  %v353_v24 = vsel %vm333_vm3, %v348_v21, %v352_v22  ;;  %v372_v40 = vor.u32 %v370_v37, %v368_v34  ;;  %v384_v46 = vrot.slane %v382_v43, 1 }
  0x17   : > { %2353 = vmatmul.mubr.msk.bf16.vlgmr.msra.gmra.mxu0 %vm479_vm2, %v345_v20  ;;  %v361_v30 = vsel %vm333_vm3, %v356_v27, %v360_v28  ;;  %v369_v36 = vsel %vm333_vm3, %v364_v33, %v368_v34  ;;  %v380_v45 = vor.u32 %v378_v42, %v376_v41  ;;  %v390_v50 = vshll.u32 %v2653_v47, 16  ;;  %v2659_v20 = vld [vmem:[%s2751_s26 + $0x68] sm:$0xff]  }
  0x18   : > { %2491 = vmatpush3.bf16.msra.mxu0 %v1235_v19  ;;  %2356 = vmatprep.mubr.msk.bf16.mxu0 %vm2692_vm1, %v2691_v0  ;;  %v377_v44 = vsel %vm333_vm3, %v372_v40, %v376_v41  ;;  %v388_v51 = vor.u32 %v386_v49, %v384_v46  ;;  %v394_v55 = vshrl.u32 %v2653_v47, 16  ;;  %v398_v56 = vshll.u32 %v2654_v53, 16 }
  0x19   : > { %2427 = vmatmul.mubr.msk.bf16.gmra.mxu1 %vm479_vm2, %v2645_v8  ;;  %v385_v48 = vsel %vm333_vm3, %v380_v45, %v384_v46  ;;  %v392_v52 = vrot.slane %v390_v50, 1  ;;  %v402_v61 = vshrl.u32 %v2654_v53, 16  ;;  %v406_v62 = vshll.u32 %v2655_v59, 16  ;;  %v2657_v8 = vld [vmem:[%s2751_s26 + $0x58] sm:$0xff]   ;;  %v915_v45 = vld [vmem:[%s2751_s26 + $0x8] sm:$0xf] }
  0x1a   : > { %2430 = vmatprep.mubr.msk.bf16.mxu1 %vm2692_vm1, %v2691_v0  ;;  %v400_v58 = vrot.slane %v398_v56, 1  ;;  %v410_v4 = vshrl.u32 %v2655_v59, 16  ;;  %v414_v5 = vshll.u32 %v2656_v2, 16  ;;  %v418_v10 = vshrl.u32 %v2656_v2, 16  ;;  %v916_v46 = vld [vmem:[%s2751_s26 + $0xc] sm:$0xf] }
  0x1b   : > { %v393_v54 = vsel %vm333_vm3, %v388_v51, %v392_v52  ;;  %v396_v57 = vor.u32 %v394_v55, %v392_v52  ;;  %v408_v1 = vrot.slane %v406_v62, 1  ;;  %v422_v11 = vshll.u32 %v2657_v8, 16  ;;  %v2665_v52 = vld [vmem:[%s2751_s26 + $0x10] sm:$0xff]  }
  0x1c   : > { %v404_v63 = vor.u32 %v402_v61, %v400_v58  ;;  %v416_v7 = vrot.slane %v414_v5, 1  ;;  %v426_v16 = vshrl.u32 %v2657_v8, 16  ;;  %v430_v17 = vshll.u32 %v2658_v14, 16 }
  0x1d   : > { %v401_v60 = vsel %vm333_vm3, %v396_v57, %v400_v58  ;;  %v412_v6 = vor.u32 %v410_v4, %v408_v1  ;;  %v434_v22 = vshrl.u32 %v2658_v14, 16  ;;  %v442_v28 = vshrl.u32 %v2659_v20, 16 }
  0x1e   : > { %v409_v3 = vsel %vm333_vm3, %v404_v63, %v408_v1  ;;  %v420_v12 = vor.u32 %v418_v10, %v416_v7  ;;  %v432_v19 = vrot.slane %v430_v17, 1  ;;  %v450_v34 = vshrl.u32 %v2660_v26, 16  ;;  %v2667_v1 = vld [vmem:[%s2751_s26 + $0x18] sm:$0xff]   ;;  %v2669_v17 = vld [vmem:[%s2751_s26 + $0x28] sm:$0xff]  }
  0x1f   : > { %2357 = vmatmul.mubr.msk.bf16.gmra.mxu0 %vm479_vm2, %v353_v24  ;;  %v417_v9 = vsel %vm333_vm3, %v412_v6, %v416_v7  ;;  %v458_v40 = vshrl.u32 %v2661_v32, 16  ;;  %v462_v41 = vshll.u32 %v2662_v38, 16  ;;  %v466_v49 = vshrl.u32 %v2662_v38, 16 }
  0x20   : > { %2360 = vmatprep.mubr.msk.bf16.mxu0 %vm2692_vm1, %v2691_v0  ;;  %v436_v24 = vor.u32 %v434_v22, %v432_v19  ;;  %v2151_v51 = vcombine.low %v915_v45, %v916_v46  ;;  %v1446_v58 = vrot.slane %v2665_v52, 1  ;;  %v1046_v62 = vshll.u32 %v2665_v52, 16 }
  0x21   : > { %2431 = vmatmul.mubr.msk.bf16.gmra.mxu1 %vm479_vm2, %v2648_v13  ;;  %v424_v13 = vrot.slane %v422_v11, 1  ;;  %v464_v43 = vrot.slane %v462_v41, 1  ;;  %v1448_v4 = vrot.slane %v2667_v1, 1  ;;  %v1050_v6 = vshrl.u32 %v2665_v52, 16  ;;  %v2672_v41 = vld [vmem:[%s2751_s26 + $0x40] sm:$0xff]  }
  0x22   : > { %2434 = vmatprep.mubr.msk.bf16.mxu1 %vm2692_vm1, %v2691_v0  ;;  %v1041_v56 = vshll.u32 %v2151_v51, 16  ;;  %v1054_v7 = vshll.u32 %v2667_v1, 16 }
  0x23   : > { %v425_v15 = vsel %vm333_vm3, %v420_v12, %v424_v13  ;;  %v428_v18 = vor.u32 %v426_v16, %v424_v13 }
  0x24   : > { %v1043_v61 = vrot.slane %v1041_v56, 1  ;;  %v1056_v11 = vrot.slane %v1054_v7, 1 }
  0x25   : > { %v433_v21 = vsel %vm333_vm3, %v428_v18, %v432_v19 }
  0x27   : > { %2361 = vmatmul.mubr.msk.bf16.gmra.mxu0 %vm479_vm2, %v361_v30 }
  0x28   : > { %2364 = vmatprep.mubr.msk.bf16.mxu0 %vm2692_vm1, %v2691_v0 }
  0x29   : > { %2435 = vmatmul.mubr.msk.bf16.gmra.mxu1 %vm479_vm2, %v2649_v23  ;;  %v438_v23 = vshll.u32 %v2659_v20, 16 }
  0x2a   : > { %2438 = vmatprep.mubr.msk.bf16.mxu1 %vm2692_vm1, %v2691_v0 }
  0x2b   : > { %v440_v25 = vrot.slane %v438_v23, 1  ;;  %v1070_v23 = vshll.u32 %v2669_v17, 16 }
  0x2d   : > { %v441_v27 = vsel %vm333_vm3, %v436_v24, %v440_v25  ;;  %v444_v30 = vor.u32 %v442_v28, %v440_v25  ;;  %v2670_v25 = vld [vmem:[%s2751_s26 + $0x30] sm:$0xff]  }
  0x2e   : > { %v1454_v28 = vrot.slane %v2670_v25, 1 }
  0x2f   : > { %2365 = vmatmul.mubr.msk.bf16.gmra.mxu0 %vm479_vm2, %v369_v36 }
  0x30   : > { %2368 = vmatprep.mubr.msk.bf16.mxu0 %vm2692_vm1, %v2691_v0 }
  0x31   : > { %2439 = vmatmul.mubr.msk.bf16.gmra.mxu1 %vm479_vm2, %v2650_v29  ;;  %v446_v29 = vshll.u32 %v2660_v26, 16 }
  0x32   : > { %2442 = vmatprep.mubr.msk.bf16.mxu1 %vm2692_vm1, %v2691_v0 }
  0x33   : > { %v448_v31 = vrot.slane %v446_v29, 1 }
  0x35   : > { %v449_v33 = vsel %vm333_vm3, %v444_v30, %v448_v31  ;;  %v452_v36 = vor.u32 %v450_v34, %v448_v31  ;;  %v1074_v30 = vshrl.u32 %v2669_v17, 16  ;;  %v1078_v31 = vshll.u32 %v2670_v25, 16 }
  0x37   : > { %2369 = vmatmul.mubr.msk.bf16.gmra.mxu0 %vm479_vm2, %v377_v44  ;;  %v2663_v44 = vld [vmem:[%s2751_s26 + $0x88] ss:$0 sps:$4 sm:$0x11]  }
  0x38   : > { %2372 = vmatprep.mubr.msk.bf16.mxu0 %vm2692_vm1, %v2691_v0  ;;  %v470_v50 = vshll.u32 %v2663_v44, 16  ;;  %v1458_v44 = vrot.slane %v2672_v41, 1 }
  0x39   : > { %2443 = vmatmul.mubr.msk.bf16.gmra.mxu1 %vm479_vm2, %v2651_v35  ;;  %v454_v35 = vshll.u32 %v2661_v32, 16 }
  0x3a   : > { %2446 = vmatprep.mubr.msk.bf16.mxu1 %vm2692_vm1, %v2691_v0  ;;  %v472_v55 = vrot.slane %v470_v50, 1 }
  0x3b   : > { %v456_v37 = vrot.slane %v454_v35, 1  ;;  %v1080_v35 = vrot.slane %v1078_v31, 1 }
  0x3d   : > { %v460_v42 = vor.u32 %v458_v40, %v456_v37 }
  0x3f   : > { %2373 = vmatmul.mubr.msk.bf16.gmra.mxu0 %vm479_vm2, %v385_v48  ;;  %v465_v48 = vsel %vm333_vm3, %v460_v42, %v464_v43 }
  0x40   : > { %2376 = vmatprep.mubr.msk.bf16.mxu0 %vm2692_vm1, %v2691_v0 }
  0x41   : > { %2447 = vmatmul.mubr.msk.bf16.gmra.mxu1 %vm479_vm2, %v2652_v39  ;;  %v457_v39 = vsel %vm333_vm3, %v452_v36, %v456_v37 }
  0x42   : > { %2450 = vmatprep.mubr.msk.bf16.mxu1 %vm2692_vm1, %v2691_v0 }
  0x47   : > { %2377 = vmatmul.mubr.msk.bf16.gmra.mxu0 %vm479_vm2, %v393_v54  ;;  %v468_v54 = vor.u32 %v466_v49, %v464_v43  ;;  %v2673_v49 = vld [vmem:[%s2751_s26 + $0x48] sm:$0xff]  }
  0x48   : > { %2380 = vmatprep.mubr.msk.bf16.mxu0 %vm2692_vm1, %v2691_v0  ;;  %v1460_v52 = vrot.slane %v2673_v49, 1 }
  0x49   : > { %2451 = vmatmul.mubr.msk.bf16.gmra.mxu1 %vm479_vm2, %v2653_v47  ;;  %v1440_v47 = vld [vmem:[%s2751_s26 + $0x8] sm:$0xe] }
  0x4a   : > { %2454 = vmatprep.mubr.msk.bf16.mxu1 %vm2692_vm1, %v2691_v0  ;;  %v1461_v56 = vsel %vm1444_vm4, %v1458_v44, %v1460_v52 }
  0x4f   : > { %2381 = vmatmul.mubr.msk.bf16.gmra.mxu0 %vm479_vm2, %v401_v60  ;;  %v1039_v60 = vshrl.u32 %v2151_v51, 16 }
  0x50   : > { %2384 = vmatprep.mubr.msk.bf16.mxu0 %vm2692_vm1, %v2691_v0 }
  0x51   : > { %2455 = vmatmul.mubr.msk.bf16.gmra.mxu1 %vm479_vm2, %v2654_v53  ;;  %v2187_v53 = vcombine.low %v1440_v47, %v916_v46  ;;  %v1094_v47 = vshll.u32 %v2672_v41, 16 }
  0x52   : > { %2458 = vmatprep.mubr.msk.bf16.mxu1 %vm2692_vm1, %v2691_v0 }
  0x53   : > { %v1445_v57 = vrot.slane %v2187_v53, 1  ;;  %v1096_v51 = vrot.slane %v1094_v47, 1 }
  0x55   : > { %v1447_v63 = vsel %vm1444_vm4, %v1445_v57, %v1446_v58  ;;  %v2674_v57 = vld [vmem:[%s2751_s26 + $0x50] sm:$0xff]  }
  0x57   : > { %2385 = vmatmul.mubr.msk.bf16.gmra.mxu0 %vm479_vm2, %v409_v3  ;;  %v1048_v3 = vrot.slane %v1046_v62, 1 }
  0x58   : > { %2388 = vmatprep.mubr.msk.bf16.mxu0 %vm2692_vm1, %v2691_v0 }
  0x59   : > { %2459 = vmatmul.mubr.msk.bf16.gmra.mxu1 %vm479_vm2, %v2655_v59  ;;  %v473_v59 = vsel %vm333_vm3, %v468_v54, %v472_v55  ;;  %v1052_v10 = vor.u32 %v1050_v6, %v1048_v3  ;;  %v1098_v54 = vshrl.u32 %v2672_v41, 16  ;;  %v1102_v55 = vshll.u32 %v2673_v49, 16  ;;  %v2677_v41 = vld [vmem:[%s2751_s26 + $0x68] sm:$0xff]  }
  0x5a   : > { %2462 = vmatprep.mubr.msk.bf16.mxu1 %vm2692_vm1, %v2691_v0 }
  0x5b   : > { %v1057_v13 = vsel %vm333_vm3, %v1052_v10, %v1056_v11 }
  0x5f   : > { %2389 = vmatmul.mubr.msk.bf16.gmra.mxu0 %vm479_vm2, %v417_v9  ;;  %v2668_v9 = vld [vmem:[%s2751_s26 + $0x20] sm:$0xff]  }
  0x60   : > { %2392 = vmatprep.mubr.msk.bf16.mxu0 %vm2692_vm1, %v2691_v0  ;;  %v1450_v12 = vrot.slane %v2668_v9, 1  ;;  %v1066_v22 = vshrl.u32 %v2668_v9, 16 }
  0x61   : > { %2463 = vmatmul.mubr.msk.bf16.gmra.mxu1 %vm479_vm2, %v2656_v2  ;;  %v1044_v2 = vor.u32 %v1043_v61, %v1039_v60  ;;  %v1104_v60 = vrot.slane %v1102_v55, 1  ;;  %v1462_v61 = vrot.slane %v2674_v57, 1 }
  0x62   : > { %2466 = vmatprep.mubr.msk.bf16.mxu1 %vm2692_vm1, %v2691_v0  ;;  %v1451_v16 = vsel %vm1444_vm4, %v1448_v4, %v1450_v12 }
  0x63   : > { %v1049_v5 = vsel %vm333_vm3, %v1044_v2, %v1048_v3  ;;  %v1106_v2 = vshrl.u32 %v2673_v49, 16  ;;  %v1110_v3 = vshll.u32 %v2674_v57, 16  ;;  %v1468_v49 = vrot.slane %v2677_v41, 1 }
  0x65   : > { %v1108_v10 = vor.u32 %v1106_v2, %v1104_v60 }
  0x67   : > { %2393 = vmatmul.mubr.msk.bf16.gmra.mxu0 %vm479_vm2, %v425_v15  ;;  %v1062_v15 = vshll.u32 %v2668_v9, 16 }
  0x68   : > { %2396 = vmatprep.mubr.msk.bf16.mxu0 %vm2692_vm1, %v2691_v0 }
  0x69   : > { %2467 = vmatmul.mubr.msk.bf16.gmra.mxu1 %vm479_vm2, %v2657_v8  ;;  %v1449_v8 = vsel %vm1444_vm4, %v1446_v58, %v1448_v4  ;;  %v1064_v19 = vrot.slane %v1062_v15, 1  ;;  %v1463_v4 = vsel %vm1444_vm4, %v1460_v52, %v1462_v61 }
  0x6a   : > { %2470 = vmatprep.mubr.msk.bf16.mxu1 %vm2692_vm1, %v2691_v0 }
  0x6f   : > { %2397 = vmatmul.mubr.msk.bf16.gmra.mxu0 %vm479_vm2, %v433_v21 }
  0x70   : > { %2400 = vmatprep.mubr.msk.bf16.mxu0 %vm2692_vm1, %v2691_v0 }
  0x71   : > { %2471 = vmatmul.mubr.msk.bf16.gmra.mxu1 %vm479_vm2, %v2658_v14  ;;  %v1058_v14 = vshrl.u32 %v2667_v1, 16 }
  0x72   : > { %2474 = vmatprep.mubr.msk.bf16.mxu1 %vm2692_vm1, %v2691_v0 }
  0x73   : > { %v1060_v18 = vor.u32 %v1058_v14, %v1056_v11  ;;  %v1112_v11 = vrot.slane %v1110_v3, 1 }
  0x75   : > { %v1065_v21 = vsel %vm333_vm3, %v1060_v18, %v1064_v19  ;;  %v1113_v18 = vsel %vm333_vm3, %v1108_v10, %v1112_v11 }
  0x77   : > { %2401 = vmatmul.mubr.msk.bf16.gmra.mxu0 %vm479_vm2, %v441_v27  ;;  %v1072_v27 = vrot.slane %v1070_v23, 1  ;;  %v2676_v23 = vld [vmem:[%s2751_s26 + $0x60] sm:$0xff]  }
  0x78   : > { %2404 = vmatprep.mubr.msk.bf16.mxu0 %vm2692_vm1, %v2691_v0  ;;  %v1466_v31 = vrot.slane %v2676_v23, 1  ;;  %v1130_v55 = vshrl.u32 %v2676_v23, 16 }
  0x79   : > { %2475 = vmatmul.mubr.msk.bf16.gmra.mxu1 %vm479_vm2, %v2659_v20  ;;  %v1452_v20 = vrot.slane %v2669_v17, 1  ;;  %v1076_v34 = vor.u32 %v1074_v30, %v1072_v27 }
  0x7a   : > { %2478 = vmatprep.mubr.msk.bf16.mxu1 %vm2692_vm1, %v2691_v0 }
  0x7b   : > { %v1453_v24 = vsel %vm1444_vm4, %v1450_v12, %v1452_v20  ;;  %v1081_v37 = vsel %vm333_vm3, %v1076_v34, %v1080_v35 }
  0x7f   : > { %2405 = vmatmul.mubr.msk.bf16.gmra.mxu0 %vm479_vm2, %v449_v33  ;;  %v2671_v33 = vld [vmem:[%s2751_s26 + $0x38] sm:$0xff]  }
  0x80   : > { %2408 = vmatprep.mubr.msk.bf16.mxu0 %vm2692_vm1, %v2691_v0  ;;  %v1456_v36 = vrot.slane %v2671_v33, 1  ;;  %v1090_v46 = vshrl.u32 %v2671_v33, 16 }
  0x81   : > { %2479 = vmatmul.mubr.msk.bf16.gmra.mxu1 %vm479_vm2, %v2660_v26  ;;  %v1068_v26 = vor.u32 %v1066_v22, %v1064_v19  ;;  %v1114_v19 = vshrl.u32 %v2674_v57, 16 }
  0x82   : > { %2482 = vmatprep.mubr.msk.bf16.mxu1 %vm2692_vm1, %v2691_v0  ;;  %v1457_v40 = vsel %vm1444_vm4, %v1454_v28, %v1456_v36 }
  0x83   : > { %v1073_v29 = vsel %vm333_vm3, %v1068_v26, %v1072_v27 }
  0x87   : > { %2409 = vmatmul.mubr.msk.bf16.gmra.mxu0 %vm479_vm2, %v457_v39  ;;  %v1086_v39 = vshll.u32 %v2671_v33, 16 }
  0x88   : > { %2412 = vmatprep.mubr.msk.bf16.mxu0 %vm2692_vm1, %v2691_v0 }
  0x89   : > { %2483 = vmatmul.mubr.msk.bf16.gmra.mxu1 %vm479_vm2, %v2661_v32  ;;  %v1455_v32 = vsel %vm1444_vm4, %v1452_v20, %v1454_v28  ;;  %v1088_v43 = vrot.slane %v1086_v39, 1  ;;  %v1116_v28 = vor.u32 %v1114_v19, %v1112_v11  ;;  %v1138_v11 = vshrl.u32 %v2677_v41, 16 }
  0x8a   : > { %2486 = vmatprep.mubr.msk.bf16.mxu1 %vm2692_vm1, %v2691_v0 }
  0x8b   : > { %v1092_v50 = vor.u32 %v1090_v46, %v1088_v43 }
  0x8d   : > { %v1097_v53 = vsel %vm333_vm3, %v1092_v50, %v1096_v51 }
  0x8f   : > { %2413 = vmatmul.mubr.msk.bf16.gmra.mxu0 %vm479_vm2, %v465_v48  ;;  %v1459_v48 = vsel %vm1444_vm4, %v1456_v36, %v1458_v44 }
  0x90   : > { %2416 = vmatprep.mubr.msk.bf16.mxu0 %vm2692_vm1, %v2691_v0 }
  0x91   : > { %2487 = vmatmul.mubr.msk.bf16.gmra.mxu1 %vm479_vm2, %v2662_v38  ;;  %v1082_v38 = vshrl.u32 %v2670_v25, 16 }
  0x92   : > { %2562 = vmatprep.mubr.msk.bf16.mxu1 %vm2692_vm1, %v2691_v0 }
  0x93   : > { %v1084_v42 = vor.u32 %v1082_v38, %v1080_v35  ;;  %v1126_v38 = vshll.u32 %v2676_v23, 16 }
  0x95   : > { %v1089_v45 = vsel %vm333_vm3, %v1084_v42, %v1088_v43  ;;  %v1128_v47 = vrot.slane %v1126_v38, 1 }
  0x97   : > { %2417 = vmatmul.mubr.msk.bf16.gmra.mxu0 %vm479_vm2, %v473_v59  ;;  %v1100_v59 = vor.u32 %v1098_v54, %v1096_v51 }
  0x98   : > { %2492 = vmatprep.mubr.msk.bf16.mxu0 %vm2692_vm1, %v2691_v0 }
  0x99   : > { %2563 = vmatmul.mubr.msk.bf16.vlgmr.msra.gmra.mxu1 %vm479_vm2, %v1447_v63  ;;  %v1105_v1 = vsel %vm333_vm3, %v1100_v59, %v1104_v60  ;;  %v2678_v59 = vld [vmem:[%s2751_s26 + $0x70] sm:$0xff]  }
  0x9a   : > { %2566 = vmatprep.mubr.msk.bf16.mxu1 %vm2692_vm1, %v2691_v0 }
  0x9f   : > { %2493 = vmatmul.mubr.msk.bf16.vlgmr.msra.gmra.mxu0 %vm479_vm2, %v1049_v5  ;;  %v2675_v5 = vld [vmem:[%s2751_s26 + $0x58] sm:$0xff]  }
  0xa0   : > { %2496 = vmatprep.mubr.msk.bf16.mxu0 %vm2692_vm1, %v2691_v0  ;;  %v1118_v20 = vshll.u32 %v2675_v5, 16 }
  0xa1   : > { %2567 = vmatmul.mubr.msk.bf16.gmra.mxu1 %vm479_vm2, %v1449_v8 }
  0xa2   : > { %2570 = vmatprep.mubr.msk.bf16.mxu1 %vm2692_vm1, %v2691_v0 }
  0xa7   : > { %2497 = vmatmul.mubr.msk.bf16.gmra.mxu0 %vm479_vm2, %v1057_v13  ;;  %v1464_v13 = vrot.slane %v2675_v5, 1 }
  0xa8   : > { %2500 = vmatprep.mubr.msk.bf16.mxu0 %vm2692_vm1, %v2691_v0 }
  0xa9   : > { %2571 = vmatmul.mubr.msk.bf16.gmra.mxu1 %vm479_vm2, %v1451_v16  ;;  %v1465_v22 = vsel %vm1444_vm4, %v1462_v61, %v1464_v13 }
  0xaa   : > { %2574 = vmatprep.mubr.msk.bf16.mxu1 %vm2692_vm1, %v2691_v0 }
  0xaf   : > { %2501 = vmatmul.mubr.msk.bf16.gmra.mxu0 %vm479_vm2, %v1065_v21 }
  0xb0   : > { %2504 = vmatprep.mubr.msk.bf16.mxu0 %vm2692_vm1, %v2691_v0 }
  0xb1   : > { %2575 = vmatmul.mubr.msk.bf16.gmra.mxu1 %vm479_vm2, %v1453_v24 }
  0xb2   : > { %2578 = vmatprep.mubr.msk.bf16.mxu1 %vm2692_vm1, %v2691_v0 }
  0xb7   : > { %2505 = vmatmul.mubr.msk.bf16.gmra.mxu0 %vm479_vm2, %v1073_v29  ;;  %v1120_v29 = vrot.slane %v1118_v20, 1 }
  0xb8   : > { %2508 = vmatprep.mubr.msk.bf16.mxu0 %vm2692_vm1, %v2691_v0 }
  0xb9   : > { %2579 = vmatmul.mubr.msk.bf16.gmra.mxu1 %vm479_vm2, %v1455_v32  ;;  %v1121_v36 = vsel %vm333_vm3, %v1116_v28, %v1120_v29 }
  0xba   : > { %2582 = vmatprep.mubr.msk.bf16.mxu1 %vm2692_vm1, %v2691_v0 }
  0xbf   : > { %2509 = vmatmul.mubr.msk.bf16.gmra.mxu0 %vm479_vm2, %v1081_v37  ;;  %v1122_v37 = vshrl.u32 %v2675_v5, 16 }
  0xc0   : > { %2512 = vmatprep.mubr.msk.bf16.mxu0 %vm2692_vm1, %v2691_v0 }
  0xc1   : > { %2583 = vmatmul.mubr.msk.bf16.gmra.mxu1 %vm479_vm2, %v1457_v40  ;;  %v1467_v40 = vsel %vm1444_vm4, %v1464_v13, %v1466_v31  ;;  %v1124_v46 = vor.u32 %v1122_v37, %v1120_v29 }
  0xc2   : > { %2586 = vmatprep.mubr.msk.bf16.mxu1 %vm2692_vm1, %v2691_v0 }
  0xc3   : > { %v1129_v54 = vsel %vm333_vm3, %v1124_v46, %v1128_v47 }
  0xc7   : > { %2513 = vmatmul.mubr.msk.bf16.gmra.mxu0 %vm479_vm2, %v1089_v45 }
  0xc8   : > { %2516 = vmatprep.mubr.msk.bf16.mxu0 %vm2692_vm1, %v2691_v0 }
  0xc9   : > { %2587 = vmatmul.mubr.msk.bf16.gmra.mxu1 %vm479_vm2, %v1459_v48 }
  0xca   : > { %2590 = vmatprep.mubr.msk.bf16.mxu1 %vm2692_vm1, %v2691_v0 }
  0xcf   : > { %2517 = vmatmul.mubr.msk.bf16.gmra.mxu0 %vm479_vm2, %v1097_v53 }
  0xd0   : > { %2520 = vmatprep.mubr.msk.bf16.mxu0 %vm2692_vm1, %v2691_v0 }
  0xd1   : > { %v780_v58 = vpop.f32.mrf.mxu1  ;;  %2591 = vmatmul.mubr.msk.bf16.gmra.mxu1 %vm479_vm2, %v1461_v56  ;;  %v1134_v56 = vshll.u32 %v2677_v41, 16 }
  0xd2   : > { %2594 = vmatprep.mubr.msk.bf16.mxu1 %vm2692_vm1, %v2691_v0 }
  0xd3   : > { %v2424_v62 = vpop.f32.mrf.mxu1  ;;  %v1136_v2 = vrot.slane %v1134_v56, 1  ;;  %v2681_v56 = vld [vmem:[%s2751_s26 + $0x88] sm:$0xff]  }
  0xd5   : > { %v783_v63 = vpop.f32.mrf.mxu1 }
  0xd7   : > { %v2425_v6 = vpop.f32.mrf.mxu1  ;;  %v569_v7 = vpop.f32.mrf.mxu0  ;;  %2521 = vmatmul.mubr.msk.bf16.gmra.mxu0 %vm479_vm2, %v1105_v1 }
  0xd8   : > { %v2971_v8 = vadd.f32 %v780_v58, %v569_v7  ;;  %2524 = vmatprep.mubr.msk.bf16.mxu0 %vm2692_vm1, %v2691_v0  ;;  %v1469_v58 = vsel %vm1444_vm4, %v1466_v31, %v1468_v49  ;;  %v1146_v31 = vshrl.u32 %v2678_v59, 16 }
  0xd9   : > { %v788_v9 = vpop.f32.mrf.mxu1  ;;  %2595 = vmatmul.mubr.msk.bf16.gmra.mxu1 %vm479_vm2, %v1463_v4  ;;  %v2354_v12 = vpop.f32.mrf.mxu0  ;;  %v1470_v4 = vrot.slane %v2678_v59, 1 }
  0xda   : > { %2598 = vmatprep.mubr.msk.bf16.mxu1 %vm2692_vm1, %v2691_v0  ;;  %v1142_v12 = vshll.u32 %v2678_v59, 16 }
  0xdb   : > { %v2428_v14 = vpop.f32.mrf.mxu1  ;;  %v572_v15 = vpop.f32.mrf.mxu0 }
  0xdc   : > { %v2978_v16 = vadd.f32 %v783_v63, %v572_v15  ;;  %v1132_v63 = vor.u32 %v1130_v55, %v1128_v47  ;;  %v1471_v14 = vsel %vm1444_vm4, %v1468_v49, %v1470_v4  ;;  %v2679_v15 = vld [vmem:[%s2751_s26 + $0x78] sm:$0xff]  }
  0xdd   : > { %v791_v17 = vpop.f32.mrf.mxu1  ;;  %v2355_v21 = vpop.f32.mrf.mxu0 }
  0xde   : > { %v1137_v10 = vsel %vm333_vm3, %v1132_v63, %v1136_v2  ;;  %v1140_v21 = vor.u32 %v1138_v11, %v1136_v2  ;;  %v1476_v2 = vrot.slane %v2681_v56, 1  ;;  %v1166_v11 = vshll.u32 %v2681_v56, 16 }
  0xdf   : > { %v2429_v24 = vpop.f32.mrf.mxu1  ;;  %v577_v25 = vpop.f32.mrf.mxu0  ;;  %2525 = vmatmul.mubr.msk.bf16.gmra.mxu0 %vm479_vm2, %v1113_v18 }
  0xe0   : > { %v2984_v26 = vadd.f32 %v788_v9, %v577_v25  ;;  %2528 = vmatprep.mubr.msk.bf16.mxu0 %vm2692_vm1, %v2691_v0  ;;  %v1472_v24 = vrot.slane %v2679_v15, 1 }
  0xe1   : > { %v796_v27 = vpop.f32.mrf.mxu1  ;;  %2599 = vmatmul.mubr.msk.bf16.gmra.mxu1 %vm479_vm2, %v1465_v22  ;;  %v2358_v30 = vpop.f32.mrf.mxu0  ;;  %v1144_v22 = vrot.slane %v1142_v12, 1 }
  0xe2   : > { %2602 = vmatprep.mubr.msk.bf16.mxu1 %vm2692_vm1, %v2691_v0 }
  0xe3   : > { %v2432_v32 = vpop.f32.mrf.mxu1  ;;  %v580_v33 = vpop.f32.mrf.mxu0  ;;  %v1145_v30 = vsel %vm333_vm3, %v1140_v21, %v1144_v22  ;;  %v1148_v41 = vor.u32 %v1146_v31, %v1144_v22  ;;  %v1168_v22 = vrot.slane %v1166_v11, 1 }
  0xe4   : > { %v2991_v34 = vadd.f32 %v791_v17, %v580_v33  ;;  %v1150_v32 = vshll.u32 %v2679_v15, 16 }
  0xe5   : > { %v799_v35 = vpop.f32.mrf.mxu1  ;;  %v2359_v39 = vpop.f32.mrf.mxu0 }
  0xe7   : > { %v2433_v42 = vpop.f32.mrf.mxu1  ;;  %v585_v43 = vpop.f32.mrf.mxu0  ;;  %2529 = vmatmul.mubr.msk.bf16.gmra.mxu0 %vm479_vm2, %v1121_v36  ;;  %v2680_v36 = vld [vmem:[%s2751_s26 + $0x80] sm:$0xff]  }
  0xe8   : > { %v2997_v44 = vadd.f32 %v796_v27, %v585_v43  ;;  %2532 = vmatprep.mubr.msk.bf16.mxu0 %vm2692_vm1, %v2691_v0  ;;  %v1152_v42 = vrot.slane %v1150_v32, 1  ;;  %v1170_v32 = vshrl.u32 %v2681_v56, 16 }
  0xe9   : > { %v804_v45 = vpop.f32.mrf.mxu1  ;;  %2603 = vmatmul.mubr.msk.bf16.gmra.mxu1 %vm479_vm2, %v1467_v40  ;;  %v2362_v48 = vpop.f32.mrf.mxu0 }
  0xea   : > { %2606 = vmatprep.mubr.msk.bf16.mxu1 %vm2692_vm1, %v2691_v0 }
  0xeb   : > { %v2436_v50 = vpop.f32.mrf.mxu1  ;;  %v588_v51 = vpop.f32.mrf.mxu0 }
  0xec   : > { %v3004_v52 = vadd.f32 %v799_v35, %v588_v51  ;;  %v1473_v35 = vsel %vm1444_vm4, %v1470_v4, %v1472_v24  ;;  %v1153_v50 = vsel %vm333_vm3, %v1148_v41, %v1152_v42  ;;  %v1154_v51 = vshrl.u32 %v2679_v15, 16 }
  0xed   : > { %v807_v53 = vpop.f32.mrf.mxu1  ;;  %v2363_v57 = vpop.f32.mrf.mxu0 }
  0xef   : > { %v2437_v60 = vpop.f32.mrf.mxu1  ;;  %v593_v61 = vpop.f32.mrf.mxu0  ;;  %2533 = vmatmul.mubr.msk.bf16.gmra.mxu0 %vm479_vm2, %v1129_v54 }
  0xf0   : > { %v3010_v62 = vadd.f32 %v804_v45, %v593_v61  ;;  %2536 = vmatprep.mubr.msk.bf16.mxu0 %vm2692_vm1, %v2691_v0  ;;  %v1474_v45 = vrot.slane %v2680_v36, 1  ;;  %v1156_v61 = vor.u32 %v1154_v51, %v1152_v42  ;;  %v1172_v42 = vor.u32 %v1170_v32, %v1168_v22 }
  0xf1   : > { %v812_v1 = vpop.f32.mrf.mxu1  ;;  %2607 = vmatmul.mubr.msk.bf16.gmra.mxu1 %vm479_vm2, %v1469_v58  ;;  %v2366_v3 = vpop.f32.mrf.mxu0 }
  0xf2   : > { %2610 = vmatprep.mubr.msk.bf16.mxu1 %vm2692_vm1, %v2691_v0  ;;  %v1475_v55 = vsel %vm1444_vm4, %v1472_v24, %v1474_v45 }
  0xf3   : > { %v2440_v5 = vpop.f32.mrf.mxu1  ;;  %v596_v6 = vpop.f32.mrf.mxu0 }
  0xf4   : > { %v3017_v7 = vadd.f32 %v807_v53, %v596_v6  ;;  %v1158_v53 = vshll.u32 %v2680_v36, 16 }
  0xf5   : > { %v815_v9 = vpop.f32.mrf.mxu1  ;;  %v2367_v13 = vpop.f32.mrf.mxu0 }
  0xf6   : > { %v1160_v63 = vrot.slane %v1158_v53, 1  ;;  %v1477_v13 = vsel %vm1444_vm4, %v1474_v45, %v1476_v2 }
  0xf7   : > { %v2441_v17 = vpop.f32.mrf.mxu1  ;;  %v601_v18 = vpop.f32.mrf.mxu0  ;;  %2537 = vmatmul.mubr.msk.bf16.gmra.mxu0 %vm479_vm2, %v1137_v10  ;;  %v1162_v10 = vshrl.u32 %v2680_v36, 16 }
  0xf8   : > { %v3023_v19 = vadd.f32 %v812_v1, %v601_v18  ;;  %2540 = vmatprep.mubr.msk.bf16.mxu0 %vm2692_vm1, %v2691_v0 }
  0xf9   : > { %v820_v20 = vpop.f32.mrf.mxu1  ;;  %2611 = vmatmul.mubr.msk.bf16.gmra.mxu1 %vm479_vm2, %v1471_v14  ;;  %v2370_v23 = vpop.f32.mrf.mxu0  ;;  %v2682_v14 = vld [vmem:[%s2751_s26 + $0x90] ss:$0 sps:$4 sm:$0x11]   ;;  %v1164_v21 = vor.u32 %v1162_v10, %v1160_v63 }
  0xfa   : > { %2614 = vmatprep.mubr.msk.bf16.mxu1 %vm2692_vm1, %v2691_v0  ;;  %v1478_v24 = vrot.slane %v2682_v14, 1 }
  0xfb   : > { %v2444_v25 = vpop.f32.mrf.mxu1  ;;  %v604_v27 = vpop.f32.mrf.mxu0  ;;  %v1169_v31 = vsel %vm333_vm3, %v1164_v21, %v1168_v22 }
  0xfc   : > { %v3030_v28 = vadd.f32 %v815_v9, %v604_v27  ;;  %v1161_v9 = vsel %vm333_vm3, %v1156_v61, %v1160_v63  ;;  %v1479_v36 = vsel %vm1444_vm4, %v1476_v2, %v1478_v24 }
  0xfd   : > { %v823_v29 = vpop.f32.mrf.mxu1  ;;  %v2371_v33 = vpop.f32.mrf.mxu0 }
  0xfe   : > { %v1174_v33 = vshll.u32 %v2682_v14, 16 }
  0xff   : > { %v2445_v37 = vpop.f32.mrf.mxu1  ;;  %v609_v38 = vpop.f32.mrf.mxu0  ;;  %2541 = vmatmul.mubr.msk.bf16.gmra.mxu0 %vm479_vm2, %v1145_v30 }
 0x100   : > { %v3036_v39 = vadd.f32 %v820_v20, %v609_v38  ;;  %2544 = vmatprep.mubr.msk.bf16.mxu0 %vm2692_vm1, %v2691_v0 }
 0x101   : > { %v828_v40 = vpop.f32.mrf.mxu1  ;;  %2615 = vmatmul.mubr.msk.bf16.gmra.mxu1 %vm479_vm2, %v1473_v35  ;;  %v2374_v43 = vpop.f32.mrf.mxu0 }
 0x102   : > { %2618 = vmatprep.mubr.msk.bf16.mxu1 %vm2692_vm1, %v2691_v0  ;;  %v1176_v43 = vrot.slane %v1174_v33, 1 }
 0x103   : > { %v2448_v46 = vpop.f32.mrf.mxu1  ;;  %v612_v47 = vpop.f32.mrf.mxu0 }
 0x104   : > { %v3043_v48 = vadd.f32 %v823_v29, %v612_v47  ;;  %v1177_v51 = vsel %vm333_vm3, %v1172_v42, %v1176_v43 }
 0x105   : > { %v831_v49 = vpop.f32.mrf.mxu1  ;;  %v2375_v54 = vpop.f32.mrf.mxu0 }
 0x107   : > { %v2449_v57 = vpop.f32.mrf.mxu1  ;;  %v617_v58 = vpop.f32.mrf.mxu0  ;;  %2545 = vmatmul.mubr.msk.bf16.gmra.mxu0 %vm479_vm2, %v1153_v50 }
 0x108   : > { %v3049_v59 = vadd.f32 %v828_v40, %v617_v58  ;;  %2548 = vmatprep.mubr.msk.bf16.mxu0 %vm2692_vm1, %v2691_v0 }
 0x109   : > { %v836_v60 = vpop.f32.mrf.mxu1  ;;  %2619 = vmatmul.mubr.msk.bf16.gmra.mxu1 %vm479_vm2, %v1475_v55  ;;  %v2378_v1 = vpop.f32.mrf.mxu0 }
 0x10a   : > { %2622 = vmatprep.mubr.msk.bf16.mxu1 %vm2692_vm1, %v2691_v0 }
 0x10b   : > { %v2452_v3 = vpop.f32.mrf.mxu1  ;;  %v620_v4 = vpop.f32.mrf.mxu0 }
 0x10c   : > { %v3056_v5 = vadd.f32 %v831_v49, %v620_v4 }
 0x10d   : > { %v839_v6 = vpop.f32.mrf.mxu1  ;;  %v2379_v12 = vpop.f32.mrf.mxu0 }
 0x10f   : > { %v2453_v15 = vpop.f32.mrf.mxu1  ;;  %v625_v17 = vpop.f32.mrf.mxu0  ;;  %2549 = vmatmul.mubr.msk.bf16.gmra.mxu0 %vm479_vm2, %v1161_v9 }
 0x110   : > { %v3062_v18 = vadd.f32 %v836_v60, %v625_v17  ;;  %2552 = vmatprep.mubr.msk.bf16.mxu0 %vm2692_vm1, %v2691_v0 }
 0x111   : > { %v844_v20 = vpop.f32.mrf.mxu1  ;;  %2623 = vmatmul.mubr.msk.bf16.gmra.mxu1 %vm479_vm2, %v1477_v13  ;;  %v2382_v23 = vpop.f32.mrf.mxu0 }
 0x112   : > { %2626 = vmatprep.mubr.msk.bf16.mxu1 %vm2692_vm1, %v2691_v0 }
 0x113   : > { %v2456_v25 = vpop.f32.mrf.mxu1  ;;  %v628_v27 = vpop.f32.mrf.mxu0 }
 0x114   : > { %v3069_v29 = vadd.f32 %v839_v6, %v628_v27 }
 0x115   : > { %v847_v30 = vpop.f32.mrf.mxu1  ;;  %v2383_v35 = vpop.f32.mrf.mxu0 }
 0x117   : > { %v2457_v37 = vpop.f32.mrf.mxu1  ;;  %v633_v38 = vpop.f32.mrf.mxu0  ;;  %2553 = vmatmul.mubr.msk.bf16.gmra.mxu0 %vm479_vm2, %v1169_v31 }
 0x118   : > { %v3074_v40 = vadd.f32 %v844_v20, %v633_v38  ;;  %2556 = vmatprep.mubr.msk.bf16.mxu0 %vm2692_vm1, %v2691_v0 }
 0x119   : > { %v852_v41 = vpop.f32.mrf.mxu1  ;;  %2627 = vmatmul.mubr.msk.bf16.gmra.mxu1 %vm479_vm2, %v1479_v36  ;;  %v2386_v45 = vpop.f32.mrf.mxu0 }
 0x11b   : > { %v2460_v46 = vpop.f32.mrf.mxu1  ;;  %v636_v47 = vpop.f32.mrf.mxu0 }
 0x11c   : > { %v3079_v49 = vadd.f32 %v847_v30, %v636_v47 }
 0x11d   : > { %v855_v50 = vpop.f32.mrf.mxu1  ;;  %v2387_v53 = vpop.f32.mrf.mxu0 }
 0x11f   : > { %v2461_v54 = vpop.f32.mrf.mxu1  ;;  %v641_v55 = vpop.f32.mrf.mxu0  ;;  %2557 = vmatmul.mubr.msk.bf16.gmra.mxu0 %vm479_vm2, %v1177_v51 }
 0x120   : > { %v3083_v56 = vadd.f32 %v852_v41, %v641_v55 }
 0x121   : > { %v860_v57 = vpop.f32.mrf.mxu1  ;;  %v2390_v58 = vpop.f32.mrf.mxu0 }
 0x123   : > { %v2464_v0 = vpop.f32.mrf.mxu1  ;;  %v644_v60 = vpop.f32.mrf.mxu0 }
 0x124   : > { %v3085_v61 = vadd.f32 %v855_v50, %v644_v60 }
 0x125   : > { %v863_v63 = vpop.f32.mrf.mxu1  ;;  %v2391_v1 = vpop.f32.mrf.mxu0 }
 0x127   : > { %v2465_v2 = vpop.f32.mrf.mxu1  ;;  %v649_v3 = vpop.f32.mrf.mxu0 }
 0x128   : > { %v3087_v4 = vadd.f32 %v860_v57, %v649_v3 }
 0x129   : > { %v868_v6 = vpop.f32.mrf.mxu1  ;;  %v2394_v9 = vpop.f32.mrf.mxu0 }
 0x12b   : > { %v2468_v10 = vpop.f32.mrf.mxu1  ;;  %v652_v11 = vpop.f32.mrf.mxu0 }
 0x12c   : > { %v3089_v12 = vadd.f32 %v863_v63, %v652_v11 }
 0x12d   : > { %v871_v13 = vpop.f32.mrf.mxu1  ;;  %v2395_v14 = vpop.f32.mrf.mxu0 }
 0x12f   : > { %v2469_v15 = vpop.f32.mrf.mxu1  ;;  %v657_v17 = vpop.f32.mrf.mxu0 }
 0x130   : > { %v3091_v20 = vadd.f32 %v868_v6, %v657_v17 }
 0x131   : > { %v876_v21 = vpop.f32.mrf.mxu1  ;;  %v2398_v22 = vpop.f32.mrf.mxu0 }
 0x133   : > { %v2472_v23 = vpop.f32.mrf.mxu1  ;;  %v660_v24 = vpop.f32.mrf.mxu0 }
 0x134   : > { %v3093_v25 = vadd.f32 %v871_v13, %v660_v24 }
 0x135   : > { %v879_v27 = vpop.f32.mrf.mxu1  ;;  %v2399_v30 = vpop.f32.mrf.mxu0 }
 0x137   : > { %v2473_v31 = vpop.f32.mrf.mxu1  ;;  %v665_v32 = vpop.f32.mrf.mxu0 }
 0x138   : > { %v3095_v33 = vadd.f32 %v876_v21, %v665_v32 }
 0x139   : > { %v884_v35 = vpop.f32.mrf.mxu1  ;;  %v2402_v36 = vpop.f32.mrf.mxu0 }
 0x13b   : > { %v2476_v37 = vpop.f32.mrf.mxu1  ;;  %v668_v38 = vpop.f32.mrf.mxu0 }
 0x13c   : > { %v3097_v41 = vadd.f32 %v879_v27, %v668_v38 }
 0x13d   : > { %v887_v42 = vpop.f32.mrf.mxu1  ;;  %v2403_v43 = vpop.f32.mrf.mxu0 }
 0x13f   : > { %v2477_v45 = vpop.f32.mrf.mxu1  ;;  %v673_v46 = vpop.f32.mrf.mxu0 }
 0x140   : > { %v3099_v47 = vadd.f32 %v884_v35, %v673_v46 }
 0x141   : > { %v892_v50 = vpop.f32.mrf.mxu1  ;;  %v2406_v51 = vpop.f32.mrf.mxu0 }
 0x143   : > { %v2480_v53 = vpop.f32.mrf.mxu1  ;;  %v676_v54 = vpop.f32.mrf.mxu0 }
 0x144   : > { %v3101_v55 = vadd.f32 %v887_v42, %v676_v54 }
 0x145   : > { %v895_v57 = vpop.f32.mrf.mxu1  ;;  %v2407_v58 = vpop.f32.mrf.mxu0 }
 0x147   : > { %v2481_v0 = vpop.f32.mrf.mxu1  ;;  %v681_v60 = vpop.f32.mrf.mxu0 }
 0x148   : > { %v3103_v63 = vadd.f32 %v892_v50, %v681_v60 }
 0x149   : > { %v900_v1 = vpop.f32.mrf.mxu1  ;;  %v2410_v2 = vpop.f32.mrf.mxu0 }
 0x14b   : > { %v2484_v3 = vpop.f32.mrf.mxu1  ;;  %v684_v6 = vpop.f32.mrf.mxu0 }
 0x14c   : > { %v3105_v9 = vadd.f32 %v895_v57, %v684_v6  ;;  %v3119_v57 = vld [vmem:[%s3306_s2] ss:$0 sm:$0xff] }
 0x14d   : > { %v903_v10 = vpop.f32.mrf.mxu1  ;;  %v2411_v11 = vpop.f32.mrf.mxu0 }
 0x14f   : > { %v2485_v13 = vpop.f32.mrf.mxu1  ;;  %v689_v14 = vpop.f32.mrf.mxu0 }
 0x150   : > { %v3107_v15 = vadd.f32 %v900_v1, %v689_v14  ;;  %v3124_v1 = vld [vmem:[%s3307_s3] ss:$0 sm:$0xff] }
 0x151   : > { %v908_v17 = vpop.f32.mrf.mxu1  ;;  %v2414_v21 = vpop.f32.mrf.mxu0 }
 0x153   : > { %v2488_v22 = vpop.f32.mrf.mxu1  ;;  %v692_v23 = vpop.f32.mrf.mxu0 }
 0x154   : > { %v3109_v24 = vadd.f32 %v903_v10, %v692_v23 }
 0x155   : > { %v911_v27 = vpop.f32.mrf.mxu1  ;;  %v2415_v30 = vpop.f32.mrf.mxu0 }
 0x157   : > { %v2489_v31 = vpop.f32.mrf.mxu1  ;;  %v697_v32 = vpop.f32.mrf.mxu0 }
 0x158   : > { %v3111_v35 = vadd.f32 %v908_v17, %v697_v32 }
 0x159   : > { %v1573_v36 = vpop.f32.mrf.mxu1  ;;  %v2418_v37 = vpop.f32.mrf.mxu0 }
 0x15b   : > { %v2564_v38 = vpop.f32.mrf.mxu1  ;;  %v700_v42 = vpop.f32.mrf.mxu0 }
 0x15c   : > { %v3113_v43 = vadd.f32 %v911_v27, %v700_v42 }
 0x15d   : > { %v1576_v45 = vpop.f32.mrf.mxu1  ;;  %v2419_v46 = vpop.f32.mrf.mxu0 }
 0x15f   : > { %v2565_v50 = vpop.f32.mrf.mxu1  ;;  %v1271_v51 = vpop.f32.mrf.mxu0 }
 0x160   : > { %v1406_v53 = vadd.f32 %v1271_v51, %v2971_v8 }
 0x161   : > { %v1581_v54 = vpop.f32.mrf.mxu1  ;;  %v2494_v58 = vpop.f32.mrf.mxu0 }
 0x162   : > { %v1708_v0 = vadd.f32 %v1573_v36, %v1406_v53 }
 0x163   : > { %v2568_v60 = vpop.f32.mrf.mxu1  ;;  %v1274_v2 = vpop.f32.mrf.mxu0 }
 0x164   : > { %v1749_v3 = vmul.f32 %v3119_v57, %v1708_v0  ;;  %v1407_v6 = vadd.f32 %v1274_v2, %v2978_v16 }
 0x165   : > { %v1584_v8 = vpop.f32.mrf.mxu1  ;;  %v2495_v10 = vpop.f32.mrf.mxu0 }
 0x166   : > { %v1790_v11 = vadd.f32 %v3124_v1, %v1749_v3  ;;  %v1709_v13 = vadd.f32 %v1576_v45, %v1407_v6 }
 0x167   : > { %v2569_v14 = vpop.f32.mrf.mxu1  ;;  %v1279_v17 = vpop.f32.mrf.mxu0 }
 0x168   : > { %v1824_v21 = vmax.f32 %v1790_v11, 0.0  ;;  %v1750_v22 = vmul.f32 %v3119_v57, %v1709_v13  ;;  %v1408_v23 = vadd.f32 %v1279_v17, %v2984_v26 }
 0x169   : > { %v1589_v27 = vpop.f32.mrf.mxu1  ;;  %v2498_v16 = vpop.f32.mrf.mxu0 }
 0x16a   : > { %v2244_v30 = vpack.c.bf16 %v1824_v21, %v1824_v21  ;;  %v1791_v31 = vadd.f32 %v3124_v1, %v1750_v22  ;;  %v1710_v32 = vadd.f32 %v1581_v54, %v1408_v23 }
 0x16b   : > { %v2572_v36 = vpop.f32.mrf.mxu1  ;;  %v1282_v37 = vpop.f32.mrf.mxu0 }
 0x16c   : > { %1995 = vst.msk [vmem:[%s3135_s10] sm:$0xf] %vm1994_vm5, %v2244_v30  ;;  %v1825_v38 = vmax.f32 %v1791_v31, 0.0  ;;  %v1751_v26 = vmul.f32 %v3119_v57, %v1710_v32  ;;  %v1409_v42 = vadd.f32 %v1282_v37, %v2991_v34 }
 0x16d   : > { %v1592_v45 = vpop.f32.mrf.mxu1  ;;  %v2499_v46 = vpop.f32.mrf.mxu0 }
 0x16e   : > { %v2245_v50 = vpack.c.bf16 %v1825_v38, %v1825_v38  ;;  %v1792_v51 = vadd.f32 %v3124_v1, %v1751_v26  ;;  %v1711_v53 = vadd.f32 %v1584_v8, %v1409_v42 }
 0x16f   : > { %v2573_v58 = vpop.f32.mrf.mxu1  ;;  %v1287_v0 = vpop.f32.mrf.mxu0 }
 0x170   : > { %1996 = vst.msk [vmem:[%s3135_s10 + $0x4] sm:$0xf] %vm1994_vm5, %v2245_v50  ;;  %v1826_v54 = vmax.f32 %v1792_v51, 0.0  ;;  %v1752_v60 = vmul.f32 %v3119_v57, %v1711_v53  ;;  %v1410_v2 = vadd.f32 %v1287_v0, %v2997_v44 }
 0x171   : > { %v1597_v3 = vpop.f32.mrf.mxu1  ;;  %v2502_v6 = vpop.f32.mrf.mxu0 }
 0x172   : > { %v2246_v10 = vpack.c.bf16 %v1826_v54, %v1826_v54  ;;  %v1793_v34 = vadd.f32 %v3124_v1, %v1752_v60  ;;  %v1712_v11 = vadd.f32 %v1589_v27, %v1410_v2 }
 0x173   : > { %v2576_v13 = vpop.f32.mrf.mxu1  ;;  %v1290_v14 = vpop.f32.mrf.mxu0 }
 0x174   : > { %1997 = vst.msk [vmem:[%s3135_s10 + $0x8] sm:$0xf] %vm1994_vm5, %v2246_v10  ;;  %v1827_v8 = vmax.f32 %v1793_v34, 0.0  ;;  %v1753_v17 = vmul.f32 %v3119_v57, %v1712_v11  ;;  %v1411_v21 = vadd.f32 %v1290_v14, %v3004_v52 }
 0x175   : > { %v1600_v22 = vpop.f32.mrf.mxu1  ;;  %v2503_v23 = vpop.f32.mrf.mxu0 }
 0x176   : > { %v2247_v16 = vpack.c.bf16 %v1827_v8, %v1827_v8  ;;  %v1794_v44 = vadd.f32 %v3124_v1, %v1753_v17  ;;  %v1713_v30 = vadd.f32 %v1592_v45, %v1411_v21 }
 0x177   : > { %v2577_v31 = vpop.f32.mrf.mxu1  ;;  %v1295_v32 = vpop.f32.mrf.mxu0 }
 0x178   : > { %1998 = vst.msk [vmem:[%s3135_s10 + $0xc] sm:$0xf] %vm1994_vm5, %v2247_v16  ;;  %v1828_v27 = vmax.f32 %v1794_v44, 0.0  ;;  %v1754_v36 = vmul.f32 %v3119_v57, %v1713_v30  ;;  %v1412_v37 = vadd.f32 %v1295_v32, %v3010_v62 }
 0x179   : > { %v1605_v38 = vpop.f32.mrf.mxu1  ;;  %v2506_v26 = vpop.f32.mrf.mxu0 }
 0x17a   : > { %v2248_v42 = vpack.c.bf16 %v1828_v27, %v1828_v27  ;;  %v1795_v52 = vadd.f32 %v3124_v1, %v1754_v36  ;;  %v1714_v46 = vadd.f32 %v1597_v3, %v1412_v37 }
 0x17b   : > { %v2580_v50 = vpop.f32.mrf.mxu1  ;;  %v1298_v51 = vpop.f32.mrf.mxu0 }
 0x17c   : > { %1999 = vst.msk [vmem:[%s3135_s10 + $0x10] sm:$0xf] %vm1994_vm5, %v2248_v42  ;;  %v1829_v45 = vmax.f32 %v1795_v52, 0.0  ;;  %v1755_v53 = vmul.f32 %v3119_v57, %v1714_v46  ;;  %v1413_v58 = vadd.f32 %v1298_v51, %v3017_v7 }
 0x17d   : > { %v1608_v0 = vpop.f32.mrf.mxu1  ;;  %v2507_v54 = vpop.f32.mrf.mxu0 }
 0x17e   : > { %v2249_v60 = vpack.c.bf16 %v1829_v45, %v1829_v45  ;;  %v1796_v62 = vadd.f32 %v3124_v1, %v1755_v53  ;;  %v1715_v2 = vadd.f32 %v1600_v22, %v1413_v58 }
 0x17f   : > { %v2581_v6 = vpop.f32.mrf.mxu1  ;;  %v1303_v10 = vpop.f32.mrf.mxu0 }
 0x180   : > { %2000 = vst.msk [vmem:[%s3135_s10 + $0x14] sm:$0xf] %vm1994_vm5, %v2249_v60  ;;  %v1830_v3 = vmax.f32 %v1796_v62, 0.0  ;;  %v1756_v34 = vmul.f32 %v3119_v57, %v1715_v2  ;;  %v1414_v11 = vadd.f32 %v1303_v10, %v3023_v19 }
 0x181   : > { %v1613_v13 = vpop.f32.mrf.mxu1  ;;  %v2510_v14 = vpop.f32.mrf.mxu0 }
 0x182   : > { %v2250_v8 = vpack.c.bf16 %v1830_v3, %v1830_v3  ;;  %v1797_v7 = vadd.f32 %v3124_v1, %v1756_v34  ;;  %v1716_v17 = vadd.f32 %v1605_v38, %v1414_v11 }
 0x183   : > { %v2584_v21 = vpop.f32.mrf.mxu1  ;;  %v1306_v23 = vpop.f32.mrf.mxu0 }
 0x184   : > { %2001 = vst.msk [vmem:[%s3135_s10 + $0x18] sm:$0xf] %vm1994_vm5, %v2250_v8  ;;  %v1831_v22 = vmax.f32 %v1797_v7, 0.0  ;;  %v1757_v16 = vmul.f32 %v3119_v57, %v1716_v17  ;;  %v1415_v44 = vadd.f32 %v1306_v23, %v3030_v28 }
 0x185   : > { %v1616_v30 = vpop.f32.mrf.mxu1  ;;  %v2511_v31 = vpop.f32.mrf.mxu0 }
 0x186   : > { %v2251_v32 = vpack.c.bf16 %v1831_v22, %v1831_v22  ;;  %v1798_v19 = vadd.f32 %v3124_v1, %v1757_v16  ;;  %v1717_v27 = vadd.f32 %v1608_v0, %v1415_v44 }
 0x187   : > { %v2585_v36 = vpop.f32.mrf.mxu1  ;;  %v1311_v37 = vpop.f32.mrf.mxu0 }
 0x188   : > { %2002 = vst.msk [vmem:[%s3135_s10 + $0x1c] sm:$0xf] %vm1994_vm5, %v2251_v32  ;;  %v1832_v38 = vmax.f32 %v1798_v19, 0.0  ;;  %v1758_v26 = vmul.f32 %v3119_v57, %v1717_v27  ;;  %v1416_v42 = vadd.f32 %v1311_v37, %v3036_v39 }
 0x189   : > { %v1621_v52 = vpop.f32.mrf.mxu1  ;;  %v2514_v46 = vpop.f32.mrf.mxu0 }
 0x18a   : > { %v2252_v50 = vpack.c.bf16 %v1832_v38, %v1832_v38  ;;  %v1799_v28 = vadd.f32 %v3124_v1, %v1758_v26  ;;  %v1718_v51 = vadd.f32 %v1613_v13, %v1416_v42 }
 0x18b   : > { %v2588_v45 = vpop.f32.mrf.mxu1  ;;  %v1314_v53 = vpop.f32.mrf.mxu0 }
 0x18c   : > { %2003 = vst.msk [vmem:[%s3135_s10 + $0x20] sm:$0xf] %vm1994_vm5, %v2252_v50  ;;  %v1833_v58 = vmax.f32 %v1799_v28, 0.0  ;;  %v1759_v0 = vmul.f32 %v3119_v57, %v1718_v51  ;;  %v1417_v54 = vadd.f32 %v1314_v53, %v3043_v48 }
 0x18d   : > { %v1624_v60 = vpop.f32.mrf.mxu1  ;;  %v2515_v62 = vpop.f32.mrf.mxu0 }
 0x18e   : > { %v2253_v2 = vpack.c.bf16 %v1833_v58, %v1833_v58  ;;  %v1800_v39 = vadd.f32 %v3124_v1, %v1759_v0  ;;  %v1719_v6 = vadd.f32 %v1616_v30, %v1417_v54 }
 0x18f   : > { %v2589_v10 = vpop.f32.mrf.mxu1  ;;  %v1319_v3 = vpop.f32.mrf.mxu0 }
 0x190   : > { %2004 = vst.msk [vmem:[%s3135_s10 + $0x24] sm:$0xf] %vm1994_vm5, %v2253_v2  ;;  %v1834_v34 = vmax.f32 %v1800_v39, 0.0  ;;  %v1760_v11 = vmul.f32 %v3119_v57, %v1719_v6  ;;  %v1418_v13 = vadd.f32 %v1319_v3, %v3049_v59 }
 0x191   : > { %v1629_v14 = vpop.f32.mrf.mxu1  ;;  %v2518_v8 = vpop.f32.mrf.mxu0 }
 0x192   : > { %v2254_v7 = vpack.c.bf16 %v1834_v34, %v1834_v34  ;;  %v1801_v48 = vadd.f32 %v3124_v1, %v1760_v11  ;;  %v1720_v17 = vadd.f32 %v1621_v52, %v1418_v13 }
 0x193   : > { %v2592_v21 = vpop.f32.mrf.mxu1  ;;  %v1322_v23 = vpop.f32.mrf.mxu0 }
 0x194   : > { %2005 = vst.msk [vmem:[%s3135_s10 + $0x28] sm:$0xf] %vm1994_vm5, %v2254_v7  ;;  %v1835_v22 = vmax.f32 %v1801_v48, 0.0  ;;  %v1761_v16 = vmul.f32 %v3119_v57, %v1720_v17  ;;  %v1419_v44 = vadd.f32 %v1322_v23, %v3056_v5 }
 0x195   : > { %v1632_v30 = vpop.f32.mrf.mxu1  ;;  %v2519_v31 = vpop.f32.mrf.mxu0 }
 0x196   : > { %v2255_v32 = vpack.c.bf16 %v1835_v22, %v1835_v22  ;;  %v1802_v59 = vadd.f32 %v3124_v1, %v1761_v16  ;;  %v1721_v19 = vadd.f32 %v1624_v60, %v1419_v44 }
 0x197   : > { %v2593_v27 = vpop.f32.mrf.mxu1  ;;  %v1327_v36 = vpop.f32.mrf.mxu0 }
 0x198   : > { %2006 = vst.msk [vmem:[%s3135_s10 + $0x2c] sm:$0xf] %vm1994_vm5, %v2255_v32  ;;  %v1836_v37 = vmax.f32 %v1802_v59, 0.0  ;;  %v1762_v38 = vmul.f32 %v3119_v57, %v1721_v19  ;;  %v1420_v26 = vadd.f32 %v1327_v36, %v3062_v18 }
 0x199   : > { %v1637_v42 = vpop.f32.mrf.mxu1  ;;  %v2522_v52 = vpop.f32.mrf.mxu0 }
 0x19a   : > { %v2256_v46 = vpack.c.bf16 %v1836_v37, %v1836_v37  ;;  %v1803_v5 = vadd.f32 %v3124_v1, %v1762_v38  ;;  %v1722_v50 = vadd.f32 %v1629_v14, %v1420_v26 }
 0x19b   : > { %v2596_v28 = vpop.f32.mrf.mxu1  ;;  %v1330_v51 = vpop.f32.mrf.mxu0 }
 0x19c   : > { %2007 = vst.msk [vmem:[%s3135_s10 + $0x30] sm:$0xf] %vm1994_vm5, %v2256_v46  ;;  %v1837_v45 = vmax.f32 %v1803_v5, 0.0  ;;  %v1763_v53 = vmul.f32 %v3119_v57, %v1722_v50  ;;  %v1421_v58 = vadd.f32 %v1330_v51, %v3069_v29 }
 0x19d   : > { %v1640_v0 = vpop.f32.mrf.mxu1  ;;  %v2523_v54 = vpop.f32.mrf.mxu0 }
 0x19e   : > { %v2257_v60 = vpack.c.bf16 %v1837_v45, %v1837_v45  ;;  %v1804_v18 = vadd.f32 %v3124_v1, %v1763_v53  ;;  %v1723_v62 = vadd.f32 %v1632_v30, %v1421_v58 }
 0x19f   : > { %v2597_v2 = vpop.f32.mrf.mxu1  ;;  %v1335_v39 = vpop.f32.mrf.mxu0 }
 0x1a0   : > { %2008 = vst.msk [vmem:[%s3135_s10 + $0x34] sm:$0xf] %vm1994_vm5, %v2257_v60  ;;  %v1838_v6 = vmax.f32 %v1804_v18, 0.0  ;;  %v1764_v10 = vmul.f32 %v3119_v57, %v1723_v62  ;;  %v1422_v3 = vadd.f32 %v1335_v39, %v3074_v40 }
 0x1a1   : > { %v1645_v34 = vpop.f32.mrf.mxu1  ;;  %v2526_v11 = vpop.f32.mrf.mxu0 }
 0x1a2   : > { %v2258_v13 = vpack.c.bf16 %v1838_v6, %v1838_v6  ;;  %v1805_v29 = vadd.f32 %v3124_v1, %v1764_v10  ;;  %v1724_v14 = vadd.f32 %v1637_v42, %v1422_v3 }
 0x1a3   : > { %v2600_v8 = vpop.f32.mrf.mxu1  ;;  %v1338_v7 = vpop.f32.mrf.mxu0 }
 0x1a4   : > { %2009 = vst.msk [vmem:[%s3135_s10 + $0x38] sm:$0xf] %vm1994_vm5, %v2258_v13  ;;  %v1839_v48 = vmax.f32 %v1805_v29, 0.0  ;;  %v1765_v17 = vmul.f32 %v3119_v57, %v1724_v14  ;;  %v1423_v21 = vadd.f32 %v1338_v7, %v3079_v49 }
 0x1a5   : > { %v1648_v23 = vpop.f32.mrf.mxu1  ;;  %v2527_v22 = vpop.f32.mrf.mxu0 }
 0x1a6   : > { %v2259_v16 = vpack.c.bf16 %v1839_v48, %v1839_v48  ;;  %v1806_v40 = vadd.f32 %v3124_v1, %v1765_v17  ;;  %v1725_v44 = vadd.f32 %v1640_v0, %v1423_v21 }
 0x1a7   : > { %v2601_v30 = vpop.f32.mrf.mxu1  ;;  %v1343_v31 = vpop.f32.mrf.mxu0 }
 0x1a8   : > { %2010 = vst.msk [vmem:[%s3135_s10 + $0x3c] sm:$0xf] %vm1994_vm5, %v2259_v16  ;;  %v1840_v32 = vmax.f32 %v1806_v40, 0.0  ;;  %v1766_v59 = vmul.f32 %v3119_v57, %v1725_v44  ;;  %v1424_v19 = vadd.f32 %v1343_v31, %v3083_v56 }
 0x1a9   : > { %v1653_v27 = vpop.f32.mrf.mxu1  ;;  %v2530_v36 = vpop.f32.mrf.mxu0 }
 0x1aa   : > { %v2260_v37 = vpack.c.bf16 %v1840_v32, %v1840_v32  ;;  %v1807_v49 = vadd.f32 %v3124_v1, %v1766_v59  ;;  %v1726_v38 = vadd.f32 %v1645_v34, %v1424_v19 }
 0x1ab   : > { %v2604_v26 = vpop.f32.mrf.mxu1  ;;  %v1346_v42 = vpop.f32.mrf.mxu0 }
 0x1ac   : > { %2011 = vst.msk [vmem:[%s3135_s10 + $0x40] sm:$0xf] %vm1994_vm5, %v2260_v37  ;;  %v1841_v52 = vmax.f32 %v1807_v49, 0.0  ;;  %v1767_v46 = vmul.f32 %v3119_v57, %v1726_v38  ;;  %v1425_v5 = vadd.f32 %v1346_v42, %v3085_v61 }
 0x1ad   : > { %v1656_v50 = vpop.f32.mrf.mxu1  ;;  %v2531_v28 = vpop.f32.mrf.mxu0 }
 0x1ae   : > { %v2261_v51 = vpack.c.bf16 %v1841_v52, %v1841_v52  ;;  %v1808_v56 = vadd.f32 %v3124_v1, %v1767_v46  ;;  %v1727_v45 = vadd.f32 %v1648_v23, %v1425_v5 }
 0x1af   : > { %v2605_v53 = vpop.f32.mrf.mxu1  ;;  %v1351_v58 = vpop.f32.mrf.mxu0 }
 0x1b0   : > { %2012 = vst.msk [vmem:[%s3135_s10 + $0x44] sm:$0xf] %vm1994_vm5, %v2261_v51  ;;  %v1842_v0 = vmax.f32 %v1808_v56, 0.0  ;;  %v1768_v54 = vmul.f32 %v3119_v57, %v1727_v45  ;;  %v1426_v60 = vadd.f32 %v1351_v58, %v3087_v4 }
 0x1b1   : > { %v1661_v18 = vpop.f32.mrf.mxu1  ;;  %v2534_v62 = vpop.f32.mrf.mxu0 }
 0x1b2   : > { %v2262_v2 = vpack.c.bf16 %v1842_v0, %v1842_v0  ;;  %v1809_v61 = vadd.f32 %v3124_v1, %v1768_v54  ;;  %v1728_v39 = vadd.f32 %v1653_v27, %v1426_v60 }
 0x1b3   : > { %v2608_v6 = vpop.f32.mrf.mxu1  ;;  %v1354_v10 = vpop.f32.mrf.mxu0 }
 0x1b4   : > { %2013 = vst.msk [vmem:[%s3135_s10 + $0x48] sm:$0xf] %vm1994_vm5, %v2262_v2  ;;  %v1843_v3 = vmax.f32 %v1809_v61, 0.0  ;;  %v1769_v34 = vmul.f32 %v3119_v57, %v1728_v39  ;;  %v1427_v11 = vadd.f32 %v1354_v10, %v3089_v12 }
 0x1b5   : > { %v1664_v13 = vpop.f32.mrf.mxu1  ;;  %v2535_v29 = vpop.f32.mrf.mxu0 }
 0x1b6   : > { %v2263_v14 = vpack.c.bf16 %v1843_v3, %v1843_v3  ;;  %v1810_v4 = vadd.f32 %v3124_v1, %v1769_v34  ;;  %v1729_v8 = vadd.f32 %v1656_v50, %v1427_v11 }
 0x1b7   : > { %v2609_v7 = vpop.f32.mrf.mxu1  ;;  %v1359_v48 = vpop.f32.mrf.mxu0 }
 0x1b8   : > { %2014 = vst.msk [vmem:[%s3135_s10 + $0x4c] sm:$0xf] %vm1994_vm5, %v2263_v14  ;;  %v1844_v17 = vmax.f32 %v1810_v4, 0.0  ;;  %v1770_v21 = vmul.f32 %v3119_v57, %v1729_v8  ;;  %v1428_v23 = vadd.f32 %v1359_v48, %v3091_v20 }
 0x1b9   : > { %v1669_v22 = vpop.f32.mrf.mxu1  ;;  %v2538_v16 = vpop.f32.mrf.mxu0 }
 0x1ba   : > { %v2264_v40 = vpack.c.bf16 %v1844_v17, %v1844_v17  ;;  %v1811_v12 = vadd.f32 %v3124_v1, %v1770_v21  ;;  %v1730_v44 = vadd.f32 %v1661_v18, %v1428_v23 }
 0x1bb   : > { %v2612_v30 = vpop.f32.mrf.mxu1  ;;  %v1362_v31 = vpop.f32.mrf.mxu0 }
 0x1bc   : > { %2015 = vst.msk [vmem:[%s3135_s10 + $0x50] sm:$0xf] %vm1994_vm5, %v2264_v40  ;;  %v1845_v32 = vmax.f32 %v1811_v12, 0.0  ;;  %v1771_v59 = vmul.f32 %v3119_v57, %v1730_v44  ;;  %v1429_v19 = vadd.f32 %v1362_v31, %v3093_v25 }
 0x1bd   : > { %v1672_v27 = vpop.f32.mrf.mxu1  ;;  %v2539_v36 = vpop.f32.mrf.mxu0 }
 0x1be   : > { %v2265_v37 = vpack.c.bf16 %v1845_v32, %v1845_v32  ;;  %v1812_v20 = vadd.f32 %v3124_v1, %v1771_v59  ;;  %v1731_v49 = vadd.f32 %v1664_v13, %v1429_v19 }
 0x1bf   : > { %v2613_v38 = vpop.f32.mrf.mxu1  ;;  %v1367_v26 = vpop.f32.mrf.mxu0 }
 0x1c0   : > { %2016 = vst.msk [vmem:[%s3135_s10 + $0x54] sm:$0xf] %vm1994_vm5, %v2265_v37  ;;  %v1846_v42 = vmax.f32 %v1812_v20, 0.0  ;;  %v1772_v52 = vmul.f32 %v3119_v57, %v1731_v49  ;;  %v1430_v46 = vadd.f32 %v1367_v26, %v3095_v33 }
 0x1c1   : > { %v1677_v5 = vpop.f32.mrf.mxu1  ;;  %v2542_v50 = vpop.f32.mrf.mxu0 }
 0x1c2   : > { %v2266_v28 = vpack.c.bf16 %v1846_v42, %v1846_v42  ;;  %v1813_v25 = vadd.f32 %v3124_v1, %v1772_v52  ;;  %v1732_v51 = vadd.f32 %v1669_v22, %v1430_v46 }
 0x1c3   : > { %v2616_v56 = vpop.f32.mrf.mxu1  ;;  %v1370_v45 = vpop.f32.mrf.mxu0 }
 0x1c4   : > { %2017 = vst.msk [vmem:[%s3135_s10 + $0x58] sm:$0xf] %vm1994_vm5, %v2266_v28  ;;  %v1847_v53 = vmax.f32 %v1813_v25, 0.0  ;;  %v1773_v58 = vmul.f32 %v3119_v57, %v1732_v51  ;;  %v1431_v0 = vadd.f32 %v1370_v45, %v3097_v41 }
 0x1c5   : > { %v1680_v54 = vpop.f32.mrf.mxu1  ;;  %v2543_v60 = vpop.f32.mrf.mxu0 }
 0x1c6   : > { %v2267_v18 = vpack.c.bf16 %v1847_v53, %v1847_v53  ;;  %v1814_v33 = vadd.f32 %v3124_v1, %v1773_v58  ;;  %v1733_v62 = vadd.f32 %v1672_v27, %v1431_v0 }
 0x1c7   : > { %v2617_v2 = vpop.f32.mrf.mxu1  ;;  %v1375_v61 = vpop.f32.mrf.mxu0 }
 0x1c8   : > { %2018 = vst.msk [vmem:[%s3135_s10 + $0x5c] sm:$0xf] %vm1994_vm5, %v2267_v18  ;;  %v1848_v39 = vmax.f32 %v1814_v33, 0.0  ;;  %v1774_v6 = vmul.f32 %v3119_v57, %v1733_v62  ;;  %v1432_v10 = vadd.f32 %v1375_v61, %v3099_v47 }
 0x1c9   : > { %v1685_v3 = vpop.f32.mrf.mxu1  ;;  %v2546_v34 = vpop.f32.mrf.mxu0 }
 0x1ca   : > { %v2268_v11 = vpack.c.bf16 %v1848_v39, %v1848_v39  ;;  %v1815_v41 = vadd.f32 %v3124_v1, %v1774_v6  ;;  %v1734_v13 = vadd.f32 %v1677_v5, %v1432_v10 }
 0x1cb   : > { %v2620_v29 = vpop.f32.mrf.mxu1  ;;  %v1378_v14 = vpop.f32.mrf.mxu0 }
 0x1cc   : > { %2019 = vst.msk [vmem:[%s3135_s10 + $0x60] sm:$0xf] %vm1994_vm5, %v2268_v11  ;;  %v1849_v4 = vmax.f32 %v1815_v41, 0.0  ;;  %v1775_v8 = vmul.f32 %v3119_v57, %v1734_v13  ;;  %v1433_v7 = vadd.f32 %v1378_v14, %v3101_v55 }
 0x1cd   : > { %v1688_v48 = vpop.f32.mrf.mxu1  ;;  %v2547_v17 = vpop.f32.mrf.mxu0 }
 0x1ce   : > { %v2269_v21 = vpack.c.bf16 %v1849_v4, %v1849_v4  ;;  %v1816_v47 = vadd.f32 %v3124_v1, %v1775_v8  ;;  %v1735_v23 = vadd.f32 %v1680_v54, %v1433_v7 }
 0x1cf   : > { %v2621_v22 = vpop.f32.mrf.mxu1  ;;  %v1383_v16 = vpop.f32.mrf.mxu0 }
 0x1d0   : > { %2020 = vst.msk [vmem:[%s3135_s10 + $0x64] sm:$0xf] %vm1994_vm5, %v2269_v21  ;;  %v1850_v40 = vmax.f32 %v1816_v47, 0.0  ;;  %v1776_v12 = vmul.f32 %v3119_v57, %v1735_v23  ;;  %v1434_v44 = vadd.f32 %v1383_v16, %v3103_v63 }
 0x1d1   : > { %v1693_v30 = vpop.f32.mrf.mxu1  ;;  %v2550_v31 = vpop.f32.mrf.mxu0 }
 0x1d2   : > { %v2270_v32 = vpack.c.bf16 %v1850_v40, %v1850_v40  ;;  %v1817_v55 = vadd.f32 %v3124_v1, %v1776_v12  ;;  %v1736_v59 = vadd.f32 %v1685_v3, %v1434_v44 }
 0x1d3   : > { %v2624_v19 = vpop.f32.mrf.mxu1  ;;  %v1386_v27 = vpop.f32.mrf.mxu0 }
 0x1d4   : > { %2021 = vst.msk [vmem:[%s3135_s10 + $0x68] sm:$0xf] %vm1994_vm5, %v2270_v32  ;;  %v1851_v36 = vmax.f32 %v1817_v55, 0.0  ;;  %v1777_v37 = vmul.f32 %v3119_v57, %v1736_v59  ;;  %v1435_v20 = vadd.f32 %v1386_v27, %v3105_v9 }
 0x1d5   : > { %v1696_v49 = vpop.f32.mrf.mxu1  ;;  %v2551_v38 = vpop.f32.mrf.mxu0 }
 0x1d6   : > { %v2271_v26 = vpack.c.bf16 %v1851_v36, %v1851_v36  ;;  %v1818_v63 = vadd.f32 %v3124_v1, %v1777_v37  ;;  %v1737_v42 = vadd.f32 %v1688_v48, %v1435_v20 }
 0x1d7   : > { %v2625_v52 = vpop.f32.mrf.mxu1  ;;  %v1391_v46 = vpop.f32.mrf.mxu0 }
 0x1d8   : > { %2022 = vst.msk [vmem:[%s3135_s10 + $0x6c] sm:$0xf] %vm1994_vm5, %v2271_v26  ;;  %v1852_v5 = vmax.f32 %v1818_v63, 0.0  ;;  %v1778_v50 = vmul.f32 %v3119_v57, %v1737_v42  ;;  %v1436_v28 = vadd.f32 %v1391_v46, %v3107_v15 }
 0x1d9   : > { %v1701_v25 = vpop.f32.mrf.mxu1  ;;  %v2554_v51 = vpop.f32.mrf.mxu0 }
 0x1da   : > { %v2272_v56 = vpack.c.bf16 %v1852_v5, %v1852_v5  ;;  %v1819_v9 = vadd.f32 %v3124_v1, %v1778_v50  ;;  %v1738_v45 = vadd.f32 %v1693_v30, %v1436_v28 }
 0x1db   : > { %v2628_v53 = vpop.f32.mrf.mxu1  ;;  %v1394_v58 = vpop.f32.mrf.mxu0 }
 0x1dc   : > { %2023 = vst.msk [vmem:[%s3135_s10 + $0x70] sm:$0xf] %vm1994_vm5, %v2272_v56  ;;  %v1853_v0 = vmax.f32 %v1819_v9, 0.0  ;;  %v1779_v54 = vmul.f32 %v3119_v57, %v1738_v45  ;;  %v1437_v60 = vadd.f32 %v1394_v58, %v3109_v24 }
 0x1dd   : > { %v1704_v18 = vpop.f32.mrf.mxu1  ;;  %v2555_v33 = vpop.f32.mrf.mxu0 }
 0x1de   : > { %v2273_v15 = vpack.c.bf16 %v1853_v0, %v1853_v0  ;;  %v1820_v62 = vadd.f32 %v3124_v1, %v1779_v54  ;;  %v1739_v2 = vadd.f32 %v1696_v49, %v1437_v60 }
 0x1df   : > { %v2629_v61 = vpop.f32.mrf.mxu1  ;;  %v1399_v39 = vpop.f32.mrf.mxu0 }
 0x1e0   : > { %2024 = vst.msk [vmem:[%s3135_s10 + $0x74] sm:$0xf] %vm1994_vm5, %v2273_v15  ;;  %v1854_v6 = vmax.f32 %v1820_v62, 0.0  ;;  %v1780_v10 = vmul.f32 %v3119_v57, %v1739_v2  ;;  %v1438_v3 = vadd.f32 %v1399_v39, %v3111_v35 }
 0x1e1   : > { %v2558_v34 = vpop.f32.mrf.mxu0 }
 0x1e2   : > { %v2274_v11 = vpack.c.bf16 %v1854_v6, %v1854_v6  ;;  %v1821_v24 = vadd.f32 %v3124_v1, %v1780_v10  ;;  %v1740_v41 = vadd.f32 %v1701_v25, %v1438_v3 }
 0x1e3   : > { %v1402_v13 = vpop.f32.mrf.mxu0 }
 0x1e4   : > { %2025 = vst.msk [vmem:[%s3135_s10 + $0x78] sm:$0xf] %vm1994_vm5, %v2274_v11  ;;  %v1855_v29 = vmax.f32 %v1821_v24, 0.0  ;;  %v1781_v14 = vmul.f32 %v3119_v57, %v1740_v41  ;;  %v1439_v4 = vadd.f32 %v1402_v13, %v3113_v43 }
 0x1e5   : > { %v2559_v8 = vpop.f32.mrf.mxu0 }
 0x1e6   : > { %v2275_v7 = vpack.c.bf16 %v1855_v29, %v1855_v29  ;;  %v1822_v48 = vadd.f32 %v3124_v1, %v1781_v14  ;;  %v1741_v35 = vadd.f32 %v1704_v18, %v1439_v4 }
 0x1e8   : > { %2026 = vst.msk [vmem:[%s3135_s10 + $0x7c] sm:$0xf] %vm1994_vm5, %v2275_v7  ;;  %v1856_v17 = vmax.f32 %v1822_v48, 0.0  ;;  %v1782_v21 = vmul.f32 %v3119_v57, %v1741_v35 }
 0x1ea   : > { %v2276_v47 = vpack.c.bf16 %v1856_v17, %v1856_v17  ;;  %v1823_v23 = vadd.f32 %v3124_v1, %v1782_v21 }
 0x1ec   : > { %2027 = vst.msk [vmem:[%s3135_s10 + $0x80] sm:$0xf] %vm1994_vm5, %v2276_v47  ;;  %v1857_v22 = vmax.f32 %v1823_v23, 0.0 }
 0x1ee   : > { %v2277_v16 = vpack.c.bf16 %v1857_v22, %v1857_v22 }
 0x1f0   : > { %2028 = vst.msk [vmem:[%s3135_s10 + $0x84] sm:$0xf] %vm1994_vm5, %v2277_v16 }
 0x1f1 PF: > { %s14_s15 = sadd.s32 1, %s2689_s15  }
 0x1f2   : > { %p11_p4 = scmp.ge.s32.totalorder %s14_s15, 4  }
 0x1f4   :  { %13 = sbr.rel (!%p11_p4) target bundleno = 1 (0x1), region = 69 }

// kernel: conv_stem_forward.5
= control target key start
LH: loop header
LB: loop body
LE: loop exit
PB: predicated region body
PF: predicated region fallthrough
CT: control target
= control target key end

     0   :  { %s1150_s15 = smov 0   ;;  %s1355_s0 = inlined_call_operand.vmem [shape: bf16[2,82,16], index: 0, kind: input, shape index: {}]   ;;  %s1356_s1 = inlined_call_operand.vmem [shape: bf16[4,16,8], index: 1, kind: input, shape index: {}]   ;;  %s1357_s2 = inlined_call_operand.vmem [shape: f32[1,8], index: 2, kind: input, shape index: {}]   ;;  %s1358_s3 = inlined_call_operand.vmem [shape: f32[1,8], index: 3, kind: input, shape index: {}]   ;;  %s1359_s4 = inlined_call_operand.vmem [shape: bf16[2,72,8], index: 4, kind: output, shape index: {}]  }
   0x1 LB: > { %s904_s16 = sadd.s32 4294967295, %s1121_s15   ;;  %p908_p0 = scmp.ge.s32.totalorder %s1121_s15, 1  ;;  %s1121_s15 = sphi %s1150_s15, %s14_s15  }
   0x2   : > { %p162_p1 = scmp.lt.s32.totalorder %s1121_s15, 3 }
   0x4   : > { %p163_p2 = pnand %p908_p0, %p162_p1 }
   0x5   : > { %p188_p3 = scmp.lt.s32.totalorder (!%p163_p2), %s904_s16, 1 }
   0x6   : > { %166 = sbr.rel (%p163_p2) target bundleno = 301 (0x12d), region = 36 }
   0xb   : > { %v1099_v0 = vld [vmem:[%s1356_s1] sm:$0xff]   ;;  %v1123_v1 = vmov 0.0   ;;  %v1100_v2 = vld [vmem:[%s1356_s1 + $0x8] sm:$0xff]   ;;  %vm1124_vm0 = vmmov 0   ;;  %s1361_s16 = smov (!%p188_p3, %s904_s16), 1  ;;  %vm291_vm1 = vcmask 130048  }
   0xc   : > { %1021 = vmatprep.subr.bf16.mxu1 %v1123_v1  ;;  %999 = vmatprep.subr.bf16.mxu0 %v1123_v1  ;;  %s1087_s21 = smul.u32 44, %s1361_s16  ;;  %v1104_v3 = vld [vmem:[%s1356_s1 + $0x18] sm:$0xff]   ;;  %vm245_vm2 = vsmask.f32 7424  ;;  %v1103_v13 = vld [vmem:[%s1356_s1 + $0x10] sm:$0xff]   ;;  %vm649_vm3 = vcmask 1046528  }
   0xd   : > { %1022 = vmatpush3.bf16.msra.mxu1 %v1099_v0  ;;  %1023 = vmatprep.mubr.msk.bf16.mxu1 %vm1124_vm0, %v1123_v1  ;;  %s1088_s7 = smul.u32 36, %s1361_s16  ;;  %vm839_vm4 = vcmask 60416  }
   0xe   : > { %1000 = vmatpush3.bf16.msra.mxu0 %v1100_v2  ;;  %1001 = vmatprep.mubr.msk.bf16.mxu0 %vm1124_vm0, %v1123_v1  ;;  %s1178_s24 = scalar_lea.vmem %s1355_s0, %s1087_s21 }
   0xf   : > { %1043 = vmatprep.subr.bf16.mxu0 %v1123_v1  ;;  %1065 = vmatprep.subr.bf16.mxu1 %v1123_v1  ;;  %v1101_v4 = vld [vmem:[%s1178_s24] sm:$0xff]   ;;  %v1102_v5 = vld [vmem:[%s1178_s24 + $0x8] sm:$0xff]   ;;  %v1105_v9 = vld [vmem:[%s1178_s24 + $0x10] sm:$0xff]   ;;  %s1306_s10 = scalar_lea.vmem %s1359_s4, %s1088_s7 }
  0x10   : > { %1024 = vmatmul.mubr.msk.bf16.vlgmr.msra.gmra.mxu1 %vm291_vm1, %v1101_v4  ;;  %v247_v6 = vshrl.u32 %v1101_v4, 16  ;;  %v249_v7 = vshll.u32 %v1101_v4, 16  ;;  %v254_v8 = vshll.u32 %v1102_v5, 16  ;;  %v258_v14 = vshrl.u32 %v1102_v5, 16  ;;  %v1106_v19 = vld [vmem:[%s1178_s24 + $0x18] sm:$0xff]   ;;  %v1110_v39 = vld [vmem:[%s1178_s24 + $0xc] sm:$0xff]  }
  0x11   : > { %1066 = vmatpush3.bf16.msra.mxu1 %v1104_v3  ;;  %1027 = vmatprep.mubr.msk.bf16.mxu1 %vm1124_vm0, %v1123_v1  ;;  %v262_v15 = vshll.u32 %v1105_v9, 16  ;;  %v266_v21 = vshrl.u32 %v1105_v9, 16  ;;  %v270_v22 = vshll.u32 %v1106_v19, 16  ;;  %v218_v23 = vld [vmem:[%s1178_s24 + $0x20] sm:$0xf]  ;;  %v274_v29 = vshrl.u32 %v1106_v19, 16 }
  0x12   : > { %v251_v10 = vrot.slane %v249_v7, 1  ;;  %v256_v11 = vrot.slane %v254_v8, 1  ;;  %v219_v24 = vld [vmem:[%s1178_s24 + $0x24] sm:$0x1]  ;;  %v470_v34 = vld [vmem:[%s1178_s24 + $0x8] sm:$0xf]  ;;  %v928_v37 = vcombine.low %v218_v23, %v218_v23 }
  0x13   : > { %v264_v18 = vrot.slane %v262_v15, 1  ;;  %v272_v26 = vrot.slane %v270_v22, 1  ;;  %v921_v27 = vcombine.low %v218_v23, %v219_v24  ;;  %v469_v33 = vld [vmem:[%s1178_s24 + $0x4] sm:$0xf]  ;;  %v651_v44 = vrot.slane %v1110_v39, 1  ;;  %v1112_v50 = vld [vmem:[%s1178_s24 + $0x14] sm:$0xff]  }
  0x14   : > { %v252_v12 = vor.u32 %v251_v10, %v247_v6  ;;  %v260_v17 = vor.u32 %v258_v14, %v256_v11  ;;  %v645_v35 = vld [vmem:[%s1178_s24 + $0x4] sm:$0xe]  ;;  %v935_v38 = vcombine.low %v469_v33, %v470_v34  ;;  %v512_v48 = vshll.u32 %v1110_v39, 16  ;;  %v1113_v58 = vld [vmem:[%s1178_s24 + $0x1c] sm:$0xff]  }
  0x15   : > { %v268_v25 = vor.u32 %v266_v21, %v264_v18  ;;  %v278_v30 = vshll.u32 %v921_v27, 16  ;;  %v276_v31 = vor.u32 %v274_v29, %v272_v26  ;;  %v946_v40 = vcombine.low %v645_v35, %v470_v34  ;;  %v1114_v3 = vld [vmem:[%s1178_s24 + $0x24] sm:$0x1f]  }
  0x16   : > { %v257_v16 = vsel %vm245_vm2, %v252_v12, %v256_v11  ;;  %v265_v20 = vsel %vm245_vm2, %v260_v17, %v264_v18  ;;  %v282_v41 = vshrl.u32 %v921_v27, 16  ;;  %v507_v42 = vshll.u32 %v935_v38, 16 }
  0x17   : > { %1002 = vmatmul.mubr.msk.bf16.vlgmr.msra.gmra.mxu0 %vm291_vm1, %v257_v16  ;;  %v273_v28 = vsel %vm245_vm2, %v268_v25, %v272_v26  ;;  %v280_v32 = vrot.slane %v278_v30, 1  ;;  %v650_v43 = vrot.slane %v946_v40, 1  ;;  %v505_v46 = vshrl.u32 %v935_v38, 16 }
  0x18   : > { %1044 = vmatpush3.bf16.msra.mxu0 %v1103_v13  ;;  %1028 = vmatmul.mubr.msk.bf16.gmra.mxu1 %vm291_vm1, %v1102_v5  ;;  %v509_v47 = vrot.slane %v507_v42, 1  ;;  %v514_v52 = vrot.slane %v512_v48, 1  ;;  %v653_v53 = vrot.slane %v1112_v50, 1  ;;  %v516_v55 = vshrl.u32 %v1110_v39, 16 }
  0x19   : > { %1005 = vmatprep.mubr.msk.bf16.mxu0 %vm1124_vm0, %v1123_v1  ;;  %1031 = vmatprep.mubr.msk.bf16.mxu1 %vm1124_vm0, %v1123_v1  ;;  %v281_v36 = vsel %vm245_vm2, %v276_v31, %v280_v32  ;;  %v284_v45 = vor.u32 %v282_v41, %v280_v32  ;;  %v652_v49 = vsel %vm649_vm3, %v650_v43, %v651_v44  ;;  %v520_v56 = vshll.u32 %v1112_v50, 16 }
  0x1a   : > { %v510_v51 = vor.u32 %v509_v47, %v505_v46  ;;  %v654_v57 = vsel %vm649_vm3, %v651_v44, %v653_v53  ;;  %v518_v59 = vor.u32 %v516_v55, %v514_v52  ;;  %v655_v61 = vrot.slane %v1113_v58, 1 }
  0x1b   : > { %v522_v60 = vrot.slane %v520_v56, 1  ;;  %v524_v63 = vshrl.u32 %v1112_v50, 16  ;;  %v528_v0 = vshll.u32 %v1113_v58, 16  ;;  %v657_v6 = vrot.slane %v1114_v3, 1 }
  0x1c   : > { %v515_v54 = vsel %vm245_vm2, %v510_v51, %v514_v52  ;;  %v656_v2 = vsel %vm649_vm3, %v653_v53, %v655_v61  ;;  %v532_v8 = vshrl.u32 %v1113_v58, 16  ;;  %v540_v14 = vshrl.u32 %v1114_v3, 16 }
  0x1d   : > { %v523_v62 = vsel %vm245_vm2, %v518_v59, %v522_v60  ;;  %v526_v4 = vor.u32 %v524_v63, %v522_v60  ;;  %v530_v5 = vrot.slane %v528_v0, 1  ;;  %v658_v10 = vsel %vm649_vm3, %v655_v61, %v657_v6  ;;  %v1292_v63 = vld [vmem:[%s1357_s2] ss:$0 sm:$0xff] }
  0x1f   : > { %1006 = vmatmul.mubr.msk.bf16.gmra.mxu0 %vm291_vm1, %v265_v20  ;;  %v531_v7 = vsel %vm245_vm2, %v526_v4, %v530_v5  ;;  %v534_v11 = vor.u32 %v532_v8, %v530_v5  ;;  %v1297_v5 = vld [vmem:[%s1358_s3] ss:$0 sm:$0xff] }
  0x20   : > { %1032 = vmatmul.mubr.msk.bf16.gmra.mxu1 %vm291_vm1, %v1105_v9  ;;  %1009 = vmatprep.mubr.msk.bf16.mxu0 %vm1124_vm0, %v1123_v1  ;;  %v536_v9 = vshll.u32 %v1114_v3, 16 }
  0x21   : > { %1035 = vmatprep.mubr.msk.bf16.mxu1 %vm1124_vm0, %v1123_v1 }
  0x22   : > { %v538_v12 = vrot.slane %v536_v9, 1 }
  0x24   : > { %v539_v13 = vsel %vm245_vm2, %v534_v11, %v538_v12  ;;  %v542_v15 = vor.u32 %v540_v14, %v538_v12 }
  0x27   : > { %1010 = vmatmul.mubr.msk.bf16.gmra.mxu0 %vm291_vm1, %v273_v28 }
  0x28   : > { %1036 = vmatmul.mubr.msk.bf16.gmra.mxu1 %vm291_vm1, %v1106_v19  ;;  %1013 = vmatprep.mubr.msk.bf16.mxu0 %vm1124_vm0, %v1123_v1 }
  0x29   : > { %1039 = vmatprep.mubr.msk.bf16.mxu1 %vm1124_vm0, %v1123_v1 }
  0x2f   : > { %1014 = vmatmul.mubr.msk.bf16.gmra.mxu0 %vm291_vm1, %v281_v36 }
  0x30   : > { %1040 = vmatmul.mubr.msk.bf16.gmra.mxu1 %vm291_vm1, %v928_v37  ;;  %1017 = vmatprep.mubr.msk.bf16.mxu0 %vm1124_vm0, %v1123_v1 }
  0x31   : > { %1067 = vmatprep.mubr.msk.bf16.mxu1 %vm1124_vm0, %v1123_v1 }
  0x37   : > { %1018 = vmatmul.mubr.msk.bf16.gmra.mxu0 %vm291_vm1, %v284_v45 }
  0x38   : > { %1068 = vmatmul.mubr.msk.bf16.vlgmr.msra.gmra.mxu1 %vm291_vm1, %v652_v49  ;;  %1045 = vmatprep.mubr.msk.bf16.mxu0 %vm1124_vm0, %v1123_v1 }
  0x39   : > { %1071 = vmatprep.mubr.msk.bf16.mxu1 %vm1124_vm0, %v1123_v1 }
  0x3f   : > { %1046 = vmatmul.mubr.msk.bf16.vlgmr.msra.gmra.mxu0 %vm291_vm1, %v515_v54 }
  0x40   : > { %1072 = vmatmul.mubr.msk.bf16.gmra.mxu1 %vm291_vm1, %v654_v57  ;;  %1049 = vmatprep.mubr.msk.bf16.mxu0 %vm1124_vm0, %v1123_v1 }
  0x41   : > { %1075 = vmatprep.mubr.msk.bf16.mxu1 %vm1124_vm0, %v1123_v1 }
  0x47   : > { %1050 = vmatmul.mubr.msk.bf16.gmra.mxu0 %vm291_vm1, %v523_v62 }
  0x48   : > { %1076 = vmatmul.mubr.msk.bf16.gmra.mxu1 %vm291_vm1, %v656_v2  ;;  %1053 = vmatprep.mubr.msk.bf16.mxu0 %vm1124_vm0, %v1123_v1 }
  0x49   : > { %1079 = vmatprep.mubr.msk.bf16.mxu1 %vm1124_vm0, %v1123_v1 }
  0x4f   : > { %1054 = vmatmul.mubr.msk.bf16.gmra.mxu0 %vm291_vm1, %v531_v7 }
  0x50   : > { %1080 = vmatmul.mubr.msk.bf16.gmra.mxu1 %vm291_vm1, %v658_v10  ;;  %1057 = vmatprep.mubr.msk.bf16.mxu0 %vm1124_vm0, %v1123_v1 }
  0x51   : > { %1083 = vmatprep.mubr.msk.bf16.mxu1 %vm1124_vm0, %v1123_v1 }
  0x57   : > { %1058 = vmatmul.mubr.msk.bf16.gmra.mxu0 %vm291_vm1, %v539_v13 }
  0x58   : > { %1084 = vmatmul.mubr.msk.bf16.gmra.mxu1 %vm291_vm1, %v657_v6  ;;  %1061 = vmatprep.mubr.msk.bf16.mxu0 %vm1124_vm0, %v1123_v1 }
  0x5f   : > { %1062 = vmatmul.mubr.msk.bf16.gmra.mxu0 %vm291_vm1, %v542_v15 }
  0xd0   : > { %v431_v16 = vpop.f32.mrf.mxu1 }
  0xd2   : > { %v1025_v17 = vpop.f32.mrf.mxu1 }
  0xd4   : > { %v434_v18 = vpop.f32.mrf.mxu1 }
  0xd6   : > { %v1026_v19 = vpop.f32.mrf.mxu1 }
  0xd7   : > { %v341_v20 = vpop.f32.mrf.mxu0 }
  0xd8   : > { %v439_v21 = vpop.f32.mrf.mxu1  ;;  %v432_v58 = vadd.f32 %v431_v16, %v341_v20 }
  0xd9   : > { %v1003_v22 = vpop.f32.mrf.mxu0 }
  0xda   : > { %v1029_v23 = vpop.f32.mrf.mxu1 }
  0xdb   : > { %v344_v24 = vpop.f32.mrf.mxu0 }
  0xdc   : > { %v1267_v25 = vpop.f32.mrf.mxu1  ;;  %v435_v2 = vadd.f32 %v434_v18, %v344_v24 }
  0xdd   : > { %v1004_v26 = vpop.f32.mrf.mxu0 }
  0xde   : > { %v1030_v27 = vpop.f32.mrf.mxu1 }
  0xdf   : > { %v349_v28 = vpop.f32.mrf.mxu0 }
  0xe0   : > { %v1269_v29 = vpop.f32.mrf.mxu1  ;;  %v440_v11 = vadd.f32 %v439_v21, %v349_v28 }
  0xe1   : > { %v1007_v1 = vpop.f32.mrf.mxu0 }
  0xe2   : > { %v1033_v30 = vpop.f32.mrf.mxu1 }
  0xe3   : > { %v352_v31 = vpop.f32.mrf.mxu0 }
  0xe4   : > { %v1271_v32 = vpop.f32.mrf.mxu1  ;;  %v443_v21 = vadd.f32 %v1267_v25, %v352_v31 }
  0xe5   : > { %v1008_v33 = vpop.f32.mrf.mxu0 }
  0xe6   : > { %v1034_v34 = vpop.f32.mrf.mxu1 }
  0xe7   : > { %v1273_v35 = vpop.f32.mrf.mxu0 }
  0xe8   : > { %v1275_v36 = vpop.f32.mrf.mxu1 }
  0xe9   : > { %v1011_v37 = vpop.f32.mrf.mxu0 }
  0xea   : > { %v1037_v38 = vpop.f32.mrf.mxu1  ;;  %v448_v37 = vadd.f32 %v1269_v29, %v1273_v35 }
  0xeb   : > { %v1277_v39 = vpop.f32.mrf.mxu0 }
  0xec   : > { %v1279_v40 = vpop.f32.mrf.mxu1 }
  0xed   : > { %v1012_v41 = vpop.f32.mrf.mxu0 }
  0xee   : > { %v1038_v42 = vpop.f32.mrf.mxu1 }
  0xef   : > { %v1281_v43 = vpop.f32.mrf.mxu0 }
  0xf0   : > { %v1283_v44 = vpop.f32.mrf.mxu1 }
  0xf1   : > { %v1015_v45 = vpop.f32.mrf.mxu0 }
  0xf2   : > { %v1041_v46 = vpop.f32.mrf.mxu1 }
  0xf3   : > { %v1285_v47 = vpop.f32.mrf.mxu0 }
  0xf4   : > { %v466_v48 = vpop.f32.mrf.mxu1 }
  0xf5   : > { %v1016_v49 = vpop.f32.mrf.mxu0 }
  0xf6   : > { %v1042_v50 = vpop.f32.mrf.mxu1 }
  0xf7   : > { %v1287_v51 = vpop.f32.mrf.mxu0 }
  0xf8   : > { %v714_v52 = vpop.f32.mrf.mxu1 }
  0xf9   : > { %v1019_v53 = vpop.f32.mrf.mxu0 }
  0xfa   : > { %v1069_v54 = vpop.f32.mrf.mxu1 }
  0xfb   : > { %v376_v55 = vpop.f32.mrf.mxu0 }
  0xfc   : > { %v717_v56 = vpop.f32.mrf.mxu1 }
  0xfd   : > { %v1020_v57 = vpop.f32.mrf.mxu0 }
  0xfe   : > { %v1070_v59 = vpop.f32.mrf.mxu1 }
  0xff   : > { %v598_v60 = vpop.f32.mrf.mxu0 }
 0x100   : > { %v636_v61 = vadd.f32 %v598_v60, %v432_v58  ;;  %v722_v62 = vpop.f32.mrf.mxu1 }
 0x101   : > { %v1047_v0 = vpop.f32.mrf.mxu0 }
 0x102   : > { %v752_v3 = vadd.f32 %v714_v52, %v636_v61  ;;  %v1073_v4 = vpop.f32.mrf.mxu1  ;;  %v451_v52 = vadd.f32 %v1271_v32, %v1277_v39  ;;  %v456_v61 = vadd.f32 %v1275_v36, %v1281_v43 }
 0x103   : > { %v601_v6 = vpop.f32.mrf.mxu0 }
 0x104   : > { %v768_v7 = vmul.f32 %v1292_v63, %v752_v3  ;;  %v637_v8 = vadd.f32 %v601_v6, %v435_v2  ;;  %v725_v9 = vpop.f32.mrf.mxu1 }
 0x105   : > { %v1048_v10 = vpop.f32.mrf.mxu0 }
 0x106   : > { %v784_v12 = vadd.f32 %v1297_v5, %v768_v7  ;;  %v753_v13 = vadd.f32 %v717_v56, %v637_v8  ;;  %v1074_v14 = vpop.f32.mrf.mxu1 }
 0x107   : > { %v606_v15 = vpop.f32.mrf.mxu0 }
 0x108   : > { %v793_v16 = vmax.f32 %v784_v12, 0.0  ;;  %v769_v17 = vmul.f32 %v1292_v63, %v753_v13  ;;  %v638_v18 = vadd.f32 %v606_v15, %v440_v11  ;;  %v730_v19 = vpop.f32.mrf.mxu1 }
 0x109   : > { %v1051_v20 = vpop.f32.mrf.mxu0 }
 0x10a   : > { %v966_v22 = vpack.c.bf16 %v793_v16, %v793_v16  ;;  %v785_v23 = vadd.f32 %v1297_v5, %v769_v17  ;;  %v754_v24 = vadd.f32 %v722_v62, %v638_v18  ;;  %v1077_v26 = vpop.f32.mrf.mxu1  ;;  %v464_v18 = vadd.f32 %v1283_v44, %v1287_v51 }
 0x10b   : > { %v609_v27 = vpop.f32.mrf.mxu0 }
 0x10c   : > { %840 = vst.msk [vmem:[%s1306_s10] sm:$0xf] %vm839_vm4, %v966_v22  ;;  %v794_v28 = vmax.f32 %v785_v23, 0.0  ;;  %v770_v1 = vmul.f32 %v1292_v63, %v754_v24  ;;  %v639_v30 = vadd.f32 %v609_v27, %v443_v21  ;;  %v733_v33 = vpop.f32.mrf.mxu1 }
 0x10d   : > { %v1052_v34 = vpop.f32.mrf.mxu0 }
 0x10e   : > { %v967_v38 = vpack.c.bf16 %v794_v28, %v794_v28  ;;  %v786_v25 = vadd.f32 %v1297_v5, %v770_v1  ;;  %v755_v31 = vadd.f32 %v725_v9, %v639_v30  ;;  %v1078_v41 = vpop.f32.mrf.mxu1  ;;  %v459_v9 = vadd.f32 %v1279_v40, %v1285_v47 }
 0x10f   : > { %v614_v42 = vpop.f32.mrf.mxu0 }
 0x110   : > { %841 = vst.msk [vmem:[%s1306_s10 + $0x4] sm:$0xf] %vm839_vm4, %v967_v38  ;;  %v795_v45 = vmax.f32 %v786_v25, 0.0  ;;  %v771_v46 = vmul.f32 %v1292_v63, %v755_v31  ;;  %v640_v48 = vadd.f32 %v614_v42, %v448_v37  ;;  %v738_v49 = vpop.f32.mrf.mxu1 }
 0x111   : > { %v1055_v50 = vpop.f32.mrf.mxu0 }
 0x112   : > { %v968_v53 = vpack.c.bf16 %v795_v45, %v795_v45  ;;  %v787_v29 = vadd.f32 %v1297_v5, %v771_v46  ;;  %v756_v35 = vadd.f32 %v730_v19, %v640_v48  ;;  %v1081_v54 = vpop.f32.mrf.mxu1 }
 0x113   : > { %v617_v55 = vpop.f32.mrf.mxu0 }
 0x114   : > { %842 = vst.msk [vmem:[%s1306_s10 + $0x8] sm:$0xf] %vm839_vm4, %v968_v53  ;;  %v796_v56 = vmax.f32 %v787_v29, 0.0  ;;  %v772_v57 = vmul.f32 %v1292_v63, %v756_v35  ;;  %v641_v58 = vadd.f32 %v617_v55, %v451_v52  ;;  %v741_v59 = vpop.f32.mrf.mxu1 }
 0x115   : > { %v1056_v60 = vpop.f32.mrf.mxu0 }
 0x116   : > { %v969_v62 = vpack.c.bf16 %v796_v56, %v796_v56  ;;  %v788_v32 = vadd.f32 %v1297_v5, %v772_v57  ;;  %v757_v39 = vadd.f32 %v733_v33, %v641_v58  ;;  %v1082_v0 = vpop.f32.mrf.mxu1 }
 0x117   : > { %v622_v2 = vpop.f32.mrf.mxu0 }
 0x118   : > { %843 = vst.msk [vmem:[%s1306_s10 + $0xc] sm:$0xf] %vm839_vm4, %v969_v62  ;;  %v797_v3 = vmax.f32 %v788_v32, 0.0  ;;  %v773_v4 = vmul.f32 %v1292_v63, %v757_v39  ;;  %v642_v6 = vadd.f32 %v622_v2, %v456_v61  ;;  %v746_v7 = vpop.f32.mrf.mxu1 }
 0x119   : > { %v1059_v8 = vpop.f32.mrf.mxu0 }
 0x11a   : > { %v970_v10 = vpack.c.bf16 %v797_v3, %v797_v3  ;;  %v789_v36 = vadd.f32 %v1297_v5, %v773_v4  ;;  %v758_v43 = vadd.f32 %v738_v49, %v642_v6  ;;  %v1085_v11 = vpop.f32.mrf.mxu1 }
 0x11b   : > { %v625_v12 = vpop.f32.mrf.mxu0 }
 0x11c   : > { %844 = vst.msk [vmem:[%s1306_s10 + $0x10] sm:$0xf] %vm839_vm4, %v970_v10  ;;  %v798_v13 = vmax.f32 %v789_v36, 0.0  ;;  %v774_v14 = vmul.f32 %v1292_v63, %v758_v43  ;;  %v643_v15 = vadd.f32 %v625_v12, %v459_v9  ;;  %v749_v16 = vpop.f32.mrf.mxu1 }
 0x11d   : > { %v1060_v17 = vpop.f32.mrf.mxu0 }
 0x11e   : > { %v971_v40 = vpack.c.bf16 %v798_v13, %v798_v13  ;;  %v790_v47 = vadd.f32 %v1297_v5, %v774_v14  ;;  %v759_v19 = vadd.f32 %v741_v59, %v643_v15  ;;  %v1086_v20 = vpop.f32.mrf.mxu1 }
 0x11f   : > { %v630_v21 = vpop.f32.mrf.mxu0 }
 0x120   : > { %845 = vst.msk [vmem:[%s1306_s10 + $0x14] sm:$0xf] %vm839_vm4, %v971_v40  ;;  %v799_v22 = vmax.f32 %v790_v47, 0.0  ;;  %v775_v23 = vmul.f32 %v1292_v63, %v759_v19  ;;  %v644_v24 = vadd.f32 %v630_v21, %v464_v18 }
 0x121   : > { %v1063_v26 = vpop.f32.mrf.mxu0 }
 0x122   : > { %v972_v27 = vpack.c.bf16 %v799_v22, %v799_v22  ;;  %v791_v28 = vadd.f32 %v1297_v5, %v775_v23  ;;  %v760_v1 = vadd.f32 %v746_v7, %v644_v24 }
 0x123   : > { %v633_v44 = vpop.f32.mrf.mxu0 }
 0x124   : > { %846 = vst.msk [vmem:[%s1306_s10 + $0x18] sm:$0xf] %vm839_vm4, %v972_v27  ;;  %v800_v51 = vmax.f32 %v791_v28, 0.0  ;;  %v776_v30 = vmul.f32 %v1292_v63, %v760_v1 }
 0x125   : > { %v1064_v33 = vpop.f32.mrf.mxu0 }
 0x126   : > { %v973_v34 = vpack.c.bf16 %v800_v51, %v800_v51  ;;  %v792_v37 = vadd.f32 %v1297_v5, %v776_v30 }
 0x128   : > { %847 = vst.msk [vmem:[%s1306_s10 + $0x1c] sm:$0xf] %vm839_vm4, %v973_v34  ;;  %v801_v38 = vmax.f32 %v792_v37, 0.0 }
 0x12a   : > { %v974_v25 = vpack.c.bf16 %v801_v38, %v801_v38 }
 0x12c   : > { %848 = vst.msk [vmem:[%s1306_s10 + $0x20] sm:$0xf] %vm839_vm4, %v974_v25 }
 0x12d PF: > { %s14_s15 = sadd.s32 1, %s1121_s15  }
 0x12e   : > { %p11_p4 = scmp.ge.s32.totalorder %s14_s15, 4  }
 0x130   :  { %13 = sbr.rel (!%p11_p4) target bundleno = 1 (0x1), region = 69 }

// kernel: conv_stem_forward.6
= control target key start
LH: loop header
LB: loop body
LE: loop exit
PB: predicated region body
PF: predicated region fallthrough
CT: control target
= control target key end

     0   :  { %s812_s15 = smov 0   ;;  %s873_s0 = inlined_call_operand.vmem [shape: bf16[2,26,32], index: 0, kind: input, shape index: {}]   ;;  %s874_s1 = inlined_call_operand.vmem [shape: bf16[4,32,16], index: 1, kind: input, shape index: {}]   ;;  %s875_s2 = inlined_call_operand.vmem [shape: f32[1,16], index: 2, kind: input, shape index: {}]   ;;  %s876_s3 = inlined_call_operand.vmem [shape: f32[1,16], index: 3, kind: input, shape index: {}]   ;;  %s877_s4 = inlined_call_operand.vmem [shape: bf16[2,20,16], index: 4, kind: output, shape index: {}]  }
   0x1 LB: > { %s655_s16 = sadd.s32 4294967295, %s785_s15   ;;  %p659_p0 = scmp.ge.s32.totalorder %s785_s15, 1  ;;  %s785_s15 = sphi %s812_s15, %s14_s15  }
   0x2   : > { %p162_p1 = scmp.lt.s32.totalorder %s785_s15, 3 }
   0x4   : > { %p163_p2 = pnand %p659_p0, %p162_p1 }
   0x5   : > { %p188_p3 = scmp.lt.s32.totalorder (!%p163_p2), %s655_s16, 1 }
   0x6   : > { %166 = sbr.rel (%p163_p2) target bundleno = 243 (0xf3), region = 36 }
   0xb   : > { %v765_v0 = vld [vmem:[%s874_s1 + $0x8] sm:$0xff]   ;;  %v766_v1 = vld [vmem:[%s874_s1 + $0x18] sm:$0xff]   ;;  %v767_v2 = vld [vmem:[%s874_s1] sm:$0xff]   ;;  %s879_s16 = smov (!%p188_p3, %s655_s16), 1  ;;  %vm258_vm0 = vcmask 261120   ;;  %vm486_vm2 = vcmask 1044480  }
   0xc   : > { %732 = vmatprep.subr.bf16.mxu1 %v765_v0  ;;  %724 = vmatprep.subr.bf16.mxu0 %v766_v1  ;;  %v768_v3 = vld [vmem:[%s874_s1 + $0x10] sm:$0xff]   ;;  %s704_s25 = sshll.u32 %s879_s16, 4  ;;  %v771_v4 = vld [vmem:[%s874_s1 + $0x38] sm:$0xff]   ;;  %vm230_vm1 = vsmask.f32 7424  ;;  %v773_v7 = vld [vmem:[%s874_s1 + $0x28] sm:$0xff]  }
   0xd   : > { %733 = vmatpush3.bf16.msra.mxu1 %v765_v0  ;;  %725 = vmatpush3.bf16.msra.mxu0 %v766_v1  ;;  %s192_s30 = scalar_lea.vmem %s873_s0, %s704_s25  ;;  %v774_v11 = vld [vmem:[%s874_s1 + $0x30] sm:$0xff]   ;;  %v775_v27 = vld [vmem:[%s874_s1 + $0x20] sm:$0xff]   ;;  %vm395_vm3 = vsmask.f32 5376  ;;  %s756_s17 = smul.u32 12, %s879_s16  ;;  %vm598_vm4 = vcmask 123904  }
   0xe   : > { %734 = vmatprep.subr.bf16.mxu1 %v767_v2  ;;  %726 = vmatprep.subr.bf16.mxu0 %v768_v3  ;;  %v769_v5 = vld [vmem:[%s192_s30] sm:$0xff]   ;;  %v770_v6 = vld [vmem:[%s192_s30 + $0x8] ss:$0 sps:$4 sm:$0x33]   ;;  %vm595_vm5 = vcmask 125952  }
   0xf   : > { %736 = vmatprep.mubr.msk.bf16.mxu1 %vm258_vm0, %v769_v5  ;;  %v772_v8 = vld [vmem:[%s192_s30 + $0x8] ss:$0 sps:$4 sm:$0x77]   ;;  %v232_v9 = vshrl.u32 %v769_v5, 16  ;;  %v234_v10 = vshll.u32 %v769_v5, 16  ;;  %s197_s20 = scalar_lea.vmem %s877_s4, %s756_s17 }
  0x10   : > { %v239_v12 = vshll.u32 %v772_v8, 16  ;;  %v243_v13 = vshrl.u32 %v772_v8, 16  ;;  %v381_v15 = vld [vmem:[%s192_s30] sm:$0xc]  ;;  %v382_v16 = vld [vmem:[%s192_s30 + $0x4] sm:$0xf] }
  0x11   : > { %735 = vmatpush3.bf16.msra.mxu1 %v767_v2  ;;  %727 = vmatpush3.bf16.msra.mxu0 %v768_v3  ;;  %v236_v14 = vrot.slane %v234_v10, 1  ;;  %v686_v18 = vcombine.low %v381_v15, %v382_v16  ;;  %v777_v20 = vld [vmem:[%s192_s30 + $0x8] sm:$0x1f]   ;;  %v482_v21 = vld [vmem:[%s192_s30] sm:$0x8] }
  0x12   : > { %748 = vmatprep.subr.bf16.mxu1 %v771_v4  ;;  %740 = vmatprep.subr.bf16.mxu0 %v773_v7  ;;  %v241_v17 = vrot.slane %v239_v12, 1  ;;  %v692_v23 = vcombine.low %v482_v21, %v382_v16  ;;  %v488_v28 = vrot.slane %v777_v20, 3  ;;  %v405_v29 = vshrl.u32 %v777_v20, 16  ;;  %v697_v55 = vld [vmem:[%s875_s2] ss:$0 sm:$0xff] }
  0x13   : > { %v237_v19 = vor.u32 %v236_v14, %v232_v9  ;;  %v397_v24 = vshrl.u32 %v686_v18, 16  ;;  %v400_v25 = vshll.u32 %v686_v18, 16  ;;  %v408_v30 = vshll.u32 %v777_v20, 16  ;;  %v698_v59 = vld [vmem:[%s876_s3] ss:$0 sm:$0xff] }
  0x14   : > { %737 = vmatmul.mubr.msk.bf16.vlgmr.msra.gmra.mxu1 %vm258_vm0, %v770_v6  ;;  %v245_v22 = vor.u32 %v243_v13, %v241_v17  ;;  %v487_v31 = vrot.slane %v692_v23, 3  ;;  %v407_v34 = vrot.slane %v405_v29, 2 }
  0x15   : > { %749 = vmatpush3.bf16.msra.mxu1 %v771_v4  ;;  %v242_v26 = vsel %vm230_vm1, %v237_v19, %v241_v17  ;;  %v399_v32 = vrot.slane %v397_v24, 2  ;;  %v402_v33 = vrot.slane %v400_v25, 3  ;;  %v410_v35 = vrot.slane %v408_v30, 3 }
  0x16   : > { %750 = vmatprep.subr.bf16.mxu1 %v774_v11  ;;  %728 = vmatprep.mubr.msk.bf16.mxu0 %vm258_vm0, %v242_v26  ;;  %v489_v36 = vsel %vm486_vm2, %v487_v31, %v488_v28 }
  0x17   : > { %729 = vmatmul.mubr.msk.bf16.vlgmr.msra.gmra.mxu0 %vm258_vm0, %v245_v22  ;;  %v403_v37 = vor.u32 %v402_v33, %v399_v32  ;;  %752 = vmatprep.mubr.msk.bf16.mxu1 %vm258_vm0, %v489_v36  ;;  %v411_v38 = vor.u32 %v410_v35, %v407_v34 }
  0x18   : > { %741 = vmatpush3.bf16.msra.mxu0 %v773_v7 }
  0x19   : > { %751 = vmatpush3.bf16.msra.mxu1 %v774_v11  ;;  %742 = vmatprep.subr.bf16.mxu0 %v775_v27  ;;  %v412_v39 = vsel %vm395_vm3, %v403_v37, %v411_v38 }
  0x1a   : > { %744 = vmatprep.mubr.msk.bf16.mxu0 %vm258_vm0, %v412_v39 }
  0x1c   : > { %753 = vmatmul.mubr.msk.bf16.vlgmr.msra.gmra.mxu1 %vm258_vm0, %v488_v28  ;;  %743 = vmatpush3.bf16.msra.mxu0 %v775_v27 }
  0x1f   : > { %745 = vmatmul.mubr.msk.bf16.vlgmr.msra.gmra.mxu0 %vm258_vm0, %v411_v38 }
  0xd4   : > { %v738_v40 = vpop.f32.mrf.mxu1 }
  0xd6   : > { %v367_v41 = vpop.f32.mrf.mxu1 }
  0xd7   : > { %v730_v44 = vpop.f32.mrf.mxu0 }
  0xd8   : > { %v739_v42 = vpop.f32.mrf.mxu1  ;;  %v376_v50 = vadd.f32 %v738_v40, %v730_v44 }
  0xd9   : > { %v299_v45 = vpop.f32.mrf.mxu0 }
  0xda   : > { %v370_v43 = vpop.f32.mrf.mxu1  ;;  %v368_v53 = vadd.f32 %v367_v41, %v299_v45 }
  0xdb   : > { %v731_v47 = vpop.f32.mrf.mxu0 }
  0xdc   : > { %v754_v46 = vpop.f32.mrf.mxu1 }
  0xdd   : > { %v302_v49 = vpop.f32.mrf.mxu0 }
  0xde   : > { %v542_v48 = vpop.f32.mrf.mxu1  ;;  %v371_v61 = vadd.f32 %v370_v43, %v302_v49 }
  0xdf   : > { %v746_v52 = vpop.f32.mrf.mxu0 }
  0xe0   : > { %v755_v51 = vpop.f32.mrf.mxu1  ;;  %v481_v54 = vadd.f32 %v746_v52, %v376_v50 }
  0xe1   : > { %v465_v56 = vpop.f32.mrf.mxu0 }
  0xe2   : > { %v558_v57 = vadd.f32 %v754_v46, %v481_v54  ;;  %v479_v58 = vadd.f32 %v465_v56, %v368_v53  ;;  %v545_v4 = vpop.f32.mrf.mxu1 }
  0xe3   : > { %v747_v60 = vpop.f32.mrf.mxu0 }
  0xe4   : > { %v568_v62 = vmul.f32 %v697_v55, %v558_v57  ;;  %v556_v63 = vadd.f32 %v542_v48, %v479_v58 }
  0xe5   : > { %v468_v0 = vpop.f32.mrf.mxu0 }
  0xe6   : > { %v578_v1 = vadd.f32 %v698_v59, %v568_v62  ;;  %v566_v2 = vmul.f32 %v697_v55, %v556_v63  ;;  %v480_v3 = vadd.f32 %v468_v0, %v371_v61 }
  0xe8   : > { %v581_v5 = vmax.f32 %v578_v1, 0.0  ;;  %v576_v6 = vadd.f32 %v698_v59, %v566_v2  ;;  %v557_v7 = vadd.f32 %v545_v4, %v480_v3 }
  0xea   : > { %v707_v8 = vpack.c.bf16 %v581_v5, %v581_v5  ;;  %v579_v9 = vmax.f32 %v576_v6, 0.0  ;;  %v567_v10 = vmul.f32 %v697_v55, %v557_v7 }
  0xec   : > { %599 = vst.msk [vmem:[%s197_s20 + $0x8] sm:$0x3] %vm598_vm4, %v707_v8  ;;  %v705_v11 = vpack.c.bf16 %v579_v9, %v579_v9  ;;  %v577_v12 = vadd.f32 %v698_v59, %v567_v10 }
  0xee   : > { %596 = vst.msk [vmem:[%s197_s20] sm:$0xf] %vm595_vm5, %v705_v11  ;;  %v580_v13 = vmax.f32 %v577_v12, 0.0 }
  0xf0   : > { %v706_v14 = vpack.c.bf16 %v580_v13, %v580_v13 }
  0xf2   : > { %597 = vst.msk [vmem:[%s197_s20 + $0x4] sm:$0xf] %vm595_vm5, %v706_v14 }
  0xf3 PF: > { %s14_s15 = sadd.s32 1, %s785_s15  }
  0xf4   : > { %p11_p4 = scmp.ge.s32.totalorder %s14_s15, 4  }
  0xf6   :  { %13 = sbr.rel (!%p11_p4) target bundleno = 1 (0x1), region = 69 }

// kernel: conv_stem_forward.7
= control target key start
LH: loop header
LB: loop body
LE: loop exit
PB: predicated region body
PF: predicated region fallthrough
CT: control target
= control target key end

     0   :  { %s948_s21 = smov 0   ;;  %s1074_s0 = inlined_call_operand.vmem [shape: bf16[2,10,64], index: 0, kind: input, shape index: {}]   ;;  %s1075_s1 = inlined_call_operand.vmem [shape: bf16[4,64,32], index: 1, kind: input, shape index: {}]   ;;  %s1076_s2 = inlined_call_operand.vmem [shape: f32[1,32], index: 2, kind: input, shape index: {}]   ;;  %s1077_s3 = inlined_call_operand.vmem [shape: f32[1,32], index: 3, kind: input, shape index: {}]   ;;  %s1078_s4 = inlined_call_operand.vmem [shape: bf16[32,32], index: 4, kind: input, shape index: {}]   ;;  %s1079_s5 = inlined_call_operand.vmem [shape: f32[1,32], index: 5, kind: input, shape index: {}]   ;;  %s1080_s6 = inlined_call_operand.vmem [shape: f32[2,6,32], index: 6, kind: output, shape index: {}]  }
   0x1 LB: > { %s729_s22 = sadd.s32 4294967295, %s909_s21   ;;  %p733_p0 = scmp.ge.s32.totalorder %s909_s21, 1  ;;  %s909_s21 = sphi %s948_s21, %s16_s21  }
   0x2   : > { %p212_p1 = scmp.lt.s32.totalorder %s909_s21, 3 }
   0x4   : > { %p213_p2 = pnand %p733_p0, %p212_p1 }
   0x5   : > { %p241_p3 = scmp.lt.s32.totalorder (!%p213_p2), %s729_s22, 1 }
   0x6   : > { %216 = sbr.rel (%p213_p2) target bundleno = 448 (0x1c0), region = 44 }
   0xb   : > { %v882_v0 = vld [vmem:[%s1075_s1 + $0x38] sm:$0xff]   ;;  %v911_v1 = vmov 0.0   ;;  %v884_v3 = vld [vmem:[%s1075_s1 + $0x30] sm:$0xff]   ;;  %vm912_vm0 = vmmov 0   ;;  %s1082_s22 = smov (!%p241_p3, %s729_s22), 1  ;;  %v886_v5 = vld [vmem:[%s1075_s1 + $0x28] sm:$0xff]  }
   0xc   : > { %816 = vmatprep.subr.bf16.mxu0 %v911_v1  ;;  %828 = vmatprep.subr.bf16.mxu1 %v911_v1  ;;  %v883_v2 = vld [vmem:[%s1075_s1 + $0x18] sm:$0xff]   ;;  %v885_v4 = vld [vmem:[%s1075_s1 + $0x10] sm:$0xff]   ;;  %s792_s9 = sshll.u32 %s1082_s22, 3  ;;  %v887_v6 = vld [vmem:[%s1075_s1 + $0x8] sm:$0xff]   ;;  %vm322_vm1 = vcmask 523264   ;;  %vm630_vm2 = vcmask 261120  }
   0xd   : > { %817 = vmatpush3.bf16.msra.mxu0 %v882_v0  ;;  %824 = vmatprep.mubr.msk.bf16.mxu0 %vm912_vm0, %v911_v1  ;;  %s991_s14 = scalar_lea.vmem %s1074_s0, %s792_s9  ;;  %v888_v8 = vld [vmem:[%s1075_s1 + $0x20] sm:$0xff]   ;;  %v891_v15 = vld [vmem:[%s1075_s1 + $0x58] sm:$0xff]   ;;  %v893_v19 = vld [vmem:[%s1075_s1 + $0x50] sm:$0xff]   ;;  %s249_s28 = scalar_lea.vmem %s1080_s6, %s792_s9  ;;  %vm674_vm3 = vcmask 259072  }
   0xe   : > { %829 = vmatpush3.bf16.msra.mxu1 %v883_v2  ;;  %818 = vmatprep.subr.bf16.mxu0 %v911_v1  ;;  %v890_v7 = vld [vmem:[%s991_s14] ss:$0 sps:$4 sm:$0xff]   ;;  %v892_v16 = vld [vmem:[%s1075_s1 + $0x78] sm:$0xff]   ;;  %v433_v17 = vld [vmem:[%s991_s14] sm:$0xe] }
   0xf   : > { %830 = vmatprep.subr.bf16.mxu1 %v911_v1  ;;  %836 = vmatprep.mubr.msk.bf16.mxu1 %vm912_vm0, %v911_v1  ;;  %v292_v9 = vshrl.u32 %v890_v7, 16  ;;  %v294_v10 = vshll.u32 %v890_v7, 16  ;;  %v889_v11 = vld [vmem:[%s1075_s1] sm:$0xff]   ;;  %v894_v21 = vld [vmem:[%s1075_s1 + $0x70] sm:$0xff]   ;;  %v895_v24 = vld [vmem:[%s1075_s1 + $0x48] sm:$0xff]  }
  0x10   : > { %v286_v13 = vld [vmem:[%s991_s14] sm:$0x7]  ;;  %v434_v18 = vld [vmem:[%s991_s14 + $0x4] sm:$0x1]  ;;  %v896_v25 = vld [vmem:[%s1075_s1 + $0x68] sm:$0xff]  }
  0x11   : > { %819 = vmatpush3.bf16.msra.mxu0 %v884_v3  ;;  %v296_v12 = vrot.slane %v294_v10, 1  ;;  %v772_v20 = vcombine.low %v433_v17, %v434_v18  ;;  %v516_v26 = vld [vmem:[%s991_s14] sm:$0xc]  ;;  %v901_v34 = vld [vmem:[%s1078_s4 + $0x8] sm:$0xff]   ;;  %v784_v48 = vld [vmem:[%s1076_s2] ss:$0 sm:$0xff] }
  0x12   : > { %831 = vmatpush3.bf16.msra.mxu1 %v885_v4  ;;  %820 = vmatprep.subr.bf16.mxu0 %v911_v1  ;;  %v897_v29 = vld [vmem:[%s1075_s1 + $0x40] sm:$0xff]   ;;  %v778_v30 = vcombine.low %v516_v26, %v434_v18 }
  0x13   : > { %832 = vmatprep.subr.bf16.mxu1 %v911_v1  ;;  %v297_v14 = vor.u32 %v296_v12, %v292_v9  ;;  %v441_v22 = vshrl.u32 %v772_v20, 16  ;;  %v444_v23 = vshll.u32 %v772_v20, 16  ;;  %v898_v31 = vld [vmem:[%s1075_s1 + $0x60] sm:$0xff]  }
  0x14   : > { %v520_v33 = vrot.slane %v778_v30, 2  ;;  %v902_v35 = vld [vmem:[%s1078_s4] sm:$0xff]  }
  0x15   : > { %821 = vmatpush3.bf16.msra.mxu0 %v886_v5  ;;  %v443_v27 = vrot.slane %v441_v22, 1  ;;  %v446_v28 = vrot.slane %v444_v23, 2  ;;  %v785_v52 = vld [vmem:[%s1077_s3] ss:$0 sm:$0xff] }
  0x16   : > { %833 = vmatpush3.bf16.msra.mxu1 %v887_v6  ;;  %822 = vmatprep.subr.bf16.mxu0 %v911_v1  ;;  %v786_v61 = vld [vmem:[%s1079_s5] ss:$0 sm:$0xff] }
  0x17   : > { %834 = vmatprep.subr.bf16.mxu1 %v911_v1  ;;  %v447_v32 = vor.u32 %v446_v28, %v443_v27 }
  0x19   : > { %823 = vmatpush3.bf16.msra.mxu0 %v888_v8 }
  0x1a   : > { %835 = vmatpush3.bf16.msra.mxu1 %v889_v11  ;;  %840 = vmatprep.subr.bf16.mxu0 %v911_v1 }
  0x1b   : > { %852 = vmatprep.subr.bf16.mxu1 %v911_v1 }
  0x1c   : > { %825 = vmatmul.mubr.msk.bf16.vlgmr.msra.gmra.mxu0 %vm322_vm1, %v297_v14 }
  0x1d   : > { %837 = vmatmul.mubr.msk.bf16.vlgmr.msra.gmra.mxu1 %vm322_vm1, %v286_v13  ;;  %841 = vmatpush3.bf16.msra.mxu0 %v891_v15 }
  0x1e   : > { %853 = vmatpush3.bf16.msra.mxu1 %v892_v16  ;;  %842 = vmatprep.subr.bf16.mxu0 %v911_v1 }
  0x1f   : > { %854 = vmatprep.subr.bf16.mxu1 %v911_v1  ;;  %848 = vmatprep.mubr.msk.bf16.mxu0 %vm912_vm0, %v911_v1 }
  0x20   : > { %860 = vmatprep.mubr.msk.bf16.mxu1 %vm912_vm0, %v911_v1 }
  0x21   : > { %843 = vmatpush3.bf16.msra.mxu0 %v893_v19 }
  0x22   : > { %855 = vmatpush3.bf16.msra.mxu1 %v894_v21  ;;  %844 = vmatprep.subr.bf16.mxu0 %v911_v1 }
  0x23   : > { %856 = vmatprep.subr.bf16.mxu1 %v911_v1 }
  0x25   : > { %845 = vmatpush3.bf16.msra.mxu0 %v895_v24 }
  0x26   : > { %857 = vmatpush3.bf16.msra.mxu1 %v896_v25  ;;  %846 = vmatprep.subr.bf16.mxu0 %v911_v1 }
  0x27   : > { %858 = vmatprep.subr.bf16.mxu1 %v911_v1 }
  0x29   : > { %847 = vmatpush3.bf16.msra.mxu0 %v897_v29 }
  0x2a   : > { %859 = vmatpush3.bf16.msra.mxu1 %v898_v31  ;;  %864 = vmatprep.subr.bf16.mxu0 %v911_v1 }
  0x2c   : > { %849 = vmatmul.mubr.msk.bf16.vlgmr.msra.gmra.mxu0 %vm322_vm1, %v447_v32 }
  0x2d   : > { %861 = vmatmul.mubr.msk.bf16.vlgmr.msra.gmra.mxu1 %vm322_vm1, %v520_v33  ;;  %868 = vmatprep.mubr.msk.bf16.mxu0 %vm912_vm0, %v911_v1 }
  0x2e   : > { %865 = vmatpush3.bf16.msra.mxu0 %v901_v34 }
  0x2f   : > { %866 = vmatprep.subr.bf16.mxu0 %v911_v1 }
  0x32   : > { %867 = vmatpush3.bf16.msra.mxu0 %v902_v35 }
  0xdc   : > { %v360_v36 = vpop.f32.mrf.mxu0 }
  0xdd   : > { %v427_v37 = vpop.f32.mrf.mxu1 }
  0xde   : > { %v826_v38 = vpop.f32.mrf.mxu0  ;;  %v428_v44 = vadd.f32 %v427_v37, %v360_v36 }
  0xdf   : > { %v838_v39 = vpop.f32.mrf.mxu1 }
  0xe0   : > { %v363_v40 = vpop.f32.mrf.mxu0 }
  0xe1   : > { %v430_v41 = vpop.f32.mrf.mxu1 }
  0xe2   : > { %v827_v42 = vpop.f32.mrf.mxu0 }
  0xe3   : > { %v839_v43 = vpop.f32.mrf.mxu1 }
  0xec   : > { %v509_v45 = vpop.f32.mrf.mxu0 }
  0xed   : > { %v515_v46 = vadd.f32 %v509_v45, %v428_v44  ;;  %v582_v47 = vpop.f32.mrf.mxu1 }
  0xee   : > { %v850_v49 = vpop.f32.mrf.mxu0 }
  0xef   : > { %v588_v50 = vadd.f32 %v582_v47, %v515_v46  ;;  %v862_v51 = vpop.f32.mrf.mxu1 }
  0xf0   : > { %v512_v53 = vpop.f32.mrf.mxu0 }
  0xf1   : > { %v596_v54 = vmul.f32 %v784_v48, %v588_v50  ;;  %v585_v55 = vpop.f32.mrf.mxu1 }
  0xf2   : > { %v851_v56 = vpop.f32.mrf.mxu0 }
  0xf3   : > { %v604_v57 = vadd.f32 %v785_v52, %v596_v54  ;;  %v863_v58 = vpop.f32.mrf.mxu1 }
  0xf5   : > { %v605_v59 = vmax.f32 %v604_v57, 0.0 }
  0xf7   : > { %v606_v60 = vpack.c.bf16 %v605_v59, %v605_v59 }
  0xf9   : > { %869 = vmatmul.mubr.msk.bf16.vlgmr.msra.gmra.mxu0 %vm630_vm2, %v606_v60 }
 0x1b9   : > { %v668_v62 = vpop.f32.mrf.mxu0 }
 0x1ba   : > { %v669_v63 = vadd.f32 %v786_v61, %v668_v62 }
 0x1bb   : > { %v870_v0 = vpop.f32.mrf.mxu0 }
 0x1bc   : > { %675 = vst.msk [vmem:[%s249_s28] sm:$0x3f] %vm674_vm3, %v669_v63 }
 0x1bd   : > { %v671_v1 = vpop.f32.mrf.mxu0 }
 0x1bf   : > { %v871_v2 = vpop.f32.mrf.mxu0 }
 0x1c0 PF: > { %s16_s21 = sadd.s32 1, %s909_s21  }
 0x1c1   : > { %p13_p4 = scmp.ge.s32.totalorder %s16_s21, 4  }
 0x1c3   :  { %15 = sbr.rel (!%p13_p4) target bundleno = 1 (0x1), region = 77 }

</bundles_post_ra>
